<compile_context>
chip_gen: v7x
topology: tpu7x:2x2x1
jax: 0.10.0
libtpu: 0.0.40
codegen_flags: <defaults>
</compile_context>

<pallas_src>
import functools
import math

import jax
import jax.numpy as jnp
from jax.experimental import pallas as pl
from jax.experimental.pallas import tpu as pltpu

_NEG_LARGE = -1e30  # finite "-inf": avoids -inf - (-inf) = NaN hazards


def mha_kernel(x_ref, wqkv_ref, bqkv_ref, wo_ref, bo_ref, out_ref, *,
               heads_count, head_dim, d_out, softmax_dtype):
    Bb, T, D_in = x_ref.shape
    H, hd = heads_count, head_dim
    mm_dtype = x_ref.dtype  # bf16 inputs -> bf16 MXU operands on v6e/v7x

    x = x_ref[...].reshape(Bb * T, D_in)          # leading-dim reshape (free)

    # Fused QKV projection: ONE wide MXU matmul (contraction D_in, width
    # 3*D_out).  Weights pre-cast + query scale pre-folded wrapper-side.
    qkv = jnp.dot(x, wqkv_ref[...], preferred_element_type=jnp.float32)
    qkv = qkv + bqkv_ref[...]                     # bias promotes to f32
    qkv = qkv.reshape(Bb, T, 3 * d_out).astype(mm_dtype)   # (Bb, T, 3*D_out)

    # Causal mask, built and broadcast ONCE, reused for every head.
    row = jax.lax.broadcasted_iota(jnp.int32, (T, T), 0)
    col = jax.lax.broadcasted_iota(jnp.int32, (T, T), 1)
    keep = jnp.broadcast_to((col <= row)[None, :, :], (Bb, T, T))

    # Per-head attention: heads are a static (unrolled) loop; each head's
    # q/k/v are direct lane slices of the projection output (no head-major
    # q/k/v copies), each matmul is a 3-D single-batch-dim einsum.
    ctx_heads = []
    for h in range(H):
        q_h = qkv[:, :, h * hd:(h + 1) * hd]                       # pre-scaled
        k_h = qkv[:, :, d_out + h * hd:d_out + (h + 1) * hd]
        v_h = qkv[:, :, 2 * d_out + h * hd:2 * d_out + (h + 1) * hd]

        s = jnp.einsum("bqd,bkd->bqk", q_h, k_h,
                       preferred_element_type=jnp.float32)          # (Bb, T, T) f32
        s = jnp.where(keep, s, _NEG_LARGE)

        # Numerically-stable softmax; probabilities in softmax_dtype (bf16 on
        # bf16 inputs -> bf16 EUP exp on v6e/v7x), reductions in f32.
        m = jnp.max(s, axis=-1, keepdims=True)
        p = jnp.exp((s - m).astype(softmax_dtype))
        l = jnp.sum(p, axis=-1, keepdims=True, dtype=jnp.float32)
        # TODO(synk): nn.Dropout(0.25) on attention weights is identity in
        # eval mode; training-mode stochastic dropout is intentionally skipped.

        ctx = jnp.einsum("bqk,bkd->bqd", p.astype(mm_dtype), v_h,
                         preferred_element_type=jnp.float32)        # (Bb, T, hd)
        # Fold the denominator into the (T, hd) context, not the (T, T) probs;
        # approx reciprocal lowers to the EUP vrcp (nearly free slot).
        ctx_heads.append(ctx * pl.reciprocal(l, approx=True))

    # Merge heads along the lane dim and run the wide output projection.
    merged = jnp.concatenate(ctx_heads, axis=-1)                    # (Bb, T, D_out)
    merged = merged.reshape(Bb * T, d_out).astype(mm_dtype)

    out = jnp.dot(merged, wo_ref[...], preferred_element_type=jnp.float32)
    out = out + bo_ref[...]
    out_ref[...] = out.reshape(Bb, T, D_in).astype(out_ref.dtype)


def _estimate_vmem_bytes(bb, T, D_in, D_out, itemsize):
    """Rough per-grid-step VMEM footprint of mha_kernel (bytes)."""
    x_io = 2 * 2 * bb * T * D_in * itemsize                # x & out blocks, double-buffered
    weights = (D_in * 3 * D_out + D_out * D_in + 4 * D_out) * itemsize  # single-buffered
    qkv = bb * T * 3 * D_out * (4 + itemsize)              # f32 accumulator + mm-dtype copy
    scores = 3 * bb * T * T * 4                            # s / masked-s / p transients (+slack)
    ctx = bb * T * D_out * (4 + itemsize)                  # merged context (f32 + cast)
    return x_io + weights + qkv + scores + ctx


def multihead_attention(x, params, heads_count, *, max_batch_block=8,
                        vmem_budget_bytes=24 * 2**20):
    B, T, D_in = x.shape
    D_out = params["wq"].shape[1]
    head_dim = D_in // heads_count
    assert D_out == heads_count * head_dim, (
        "PyTorch forward requires output_dimension == heads_count * head_dimension")

    itemsize = jnp.dtype(x.dtype).itemsize
    scale = 1.0 / math.sqrt(head_dim)

    # One-off wrapper-side prep (plain XLA ops):
    #   * fuse Wq|Wk|Wv (and biases) into a single wide projection,
    #   * fold the 1/sqrt(head_dim) query scale into Wq / bq,
    #   * cast to the MXU dtype so the kernel never re-casts and weight
    #     DMA / VMEM bytes are halved for bf16 activations.
    w_qkv = jnp.concatenate(
        [params["wq"] * scale, params["wk"], params["wv"]], axis=1).astype(x.dtype)
    b_qkv = jnp.concatenate(
        [params["bq"] * scale, params["bk"], params["bv"]], axis=1).astype(x.dtype)
    w_o = params["wo"].astype(x.dtype)
    b_o = params["bo"].astype(x.dtype)

    # VMEM-aware batch block: largest divisor of B under the budget (capped at
    # max_batch_block), then kept <= B//2 when possible so the grid has >= 2
    # "parallel" steps and both v7x TensorCores get work.
    divisors = [d for d in range(1, B + 1) if B % d == 0 and d <= max_batch_block]
    feasible = [d for d in divisors
                if _estimate_vmem_bytes(d, T, D_in, D_out, itemsize) <= vmem_budget_bytes]
    feasible = feasible or [1]
    bb = max(feasible)
    if B >= 2 and B // bb < 2:
        two_step = [d for d in feasible if B // d >= 2]
        if two_step:
            bb = max(two_step)

    est = _estimate_vmem_bytes(bb, T, D_in, D_out, itemsize)
    vmem_limit = int(min(48 * 2**20, max(32 * 2**20, 2 * est)))

    # bf16 inputs -> bf16 softmax probabilities (bf16 EUP/VPU on v6e/v7x).
    # TODO(synk): gate this off on v5e (no bf16 VPU/EUP) via a hardware query.
    softmax_dtype = jnp.bfloat16 if x.dtype == jnp.bfloat16 else jnp.float32

    kernel = functools.partial(mha_kernel, heads_count=heads_count,
                               head_dim=head_dim, d_out=D_out,
                               softmax_dtype=softmax_dtype)

    def call(single_buffer_weights):
        def rep(shape):
            # Grid-constant (replicated) operand: same block every step, so
            # single buffering -- no wasted second VMEM copy of the weights.
            kw = {"pipeline_mode": pl.Buffered(1)} if single_buffer_weights else {}
            return pl.BlockSpec(shape, lambda b: (0,) * len(shape), **kw)

        return pl.pallas_call(
            kernel,
            out_shape=jax.ShapeDtypeStruct((B, T, D_in), x.dtype),
            grid=(B // bb,),
            in_specs=[
                pl.BlockSpec((bb, T, D_in), lambda b: (b, 0, 0)),   # x block
                rep((D_in, 3 * D_out)),                             # fused Wqkv (scaled, cast)
                rep((1, 3 * D_out)),                                # fused bqkv
                rep((D_out, D_in)),                                 # Wo
                rep((1, D_in)),                                     # bo
            ],
            out_specs=pl.BlockSpec((bb, T, D_in), lambda b: (b, 0, 0)),
            compiler_params=pltpu.CompilerParams(
                dimension_semantics=("parallel",),
                vmem_limit_bytes=vmem_limit),
        )(x, w_qkv, b_qkv, w_o, b_o)

    try:
        return call(single_buffer_weights=True)
    except Exception:  # fallback for JAX versions without BlockSpec.pipeline_mode
        return call(single_buffer_weights=False)


def reference_mha(x, params, heads_count):
    """Pure-JAX reference mirroring the PyTorch forward (dropout in eval mode)."""
    B, T, D_in = x.shape
    head_dim = D_in // heads_count
    q = x @ params["wq"] + params["bq"][0]
    k = x @ params["wk"] + params["bk"][0]
    v = x @ params["wv"] + params["bv"][0]

    def split(t):  # (B, T, H*hd) -> (B, H, T, hd)
        return t.reshape(B, T, heads_count, head_dim).transpose(0, 2, 1, 3)

    q, k, v = split(q), split(k), split(v)
    s = jnp.einsum("bhqd,bhkd->bhqk", q, k) / math.sqrt(head_dim)
    mask = jnp.triu(jnp.ones((T, T), dtype=bool), k=1)
    s = jnp.where(mask[None, None], -jnp.inf, s)
    w = jax.nn.softmax(s, axis=-1)
    ctx = jnp.einsum("bhqk,bhkd->bhqd", w, v)
    ctx = ctx.transpose(0, 2, 1, 3).reshape(B, T, heads_count * head_dim)
    return ctx @ params["wo"] + params["bo"][0]


def init_params(key, input_dim, output_dim):
    """Deterministic nn.Linear-style init: U(-1/sqrt(fan_in), 1/sqrt(fan_in))."""
    keys = jax.random.split(key, 8)

    def lin(kw, kb, fan_in, fan_out):
        bound = 1.0 / math.sqrt(fan_in)
        w = jax.random.uniform(kw, (fan_in, fan_out), jnp.float32, -bound, bound)
        b = jax.random.uniform(kb, (1, fan_out), jnp.float32, -bound, bound)
        return w, b

    wq, bq = lin(keys[0], keys[1], input_dim, output_dim)
    wk, bk = lin(keys[2], keys[3], input_dim, output_dim)
    wv, bv = lin(keys[4], keys[5], input_dim, output_dim)
    wo, bo = lin(keys[6], keys[7], output_dim, input_dim)
    return dict(wq=wq, bq=bq, wk=wk, bk=bk, wv=wv, bv=bv, wo=wo, bo=bo)


if __name__ == "__main__":
    # Small config: input_dimension = output_dimension = 32, heads = 4,
    # context_length = seq_len = 8, batch = 2.
    B, T, D = 2, 8, 32
    HEADS = 4

    key = jax.random.PRNGKey(0)
    k_x, k_p = jax.random.split(key)
    x = jax.random.normal(k_x, (B, T, D), dtype=jnp.float32)
    params = init_params(k_p, D, D)

    out = multihead_attention(x, params, HEADS)
    out = jax.block_until_ready(out)

    ref = reference_mha(x, params, HEADS)
    assert out.shape == (B, T, D)
    # Tolerance covers the approx (EUP vrcp) softmax reciprocal (~2^-12 rel).
    assert jnp.allclose(out, ref, atol=2e-3, rtol=2e-3), "Pallas output mismatch vs reference"

    print("KERNEL_OK")
</pallas_src>

<mosaic_0001>
module attributes {stable_mosaic.version = 11 : i64} {
  func.func @mha_kernel(%arg0: i32, %arg1: memref<1x8x32xf32, #tpu.memory_space<vmem>>, %arg2: memref<32x96xf32, #tpu.memory_space<vmem>>, %arg3: memref<1x96xf32, #tpu.memory_space<vmem>>, %arg4: memref<32x32xf32, #tpu.memory_space<vmem>>, %arg5: memref<1x32xf32, #tpu.memory_space<vmem>>, %arg6: memref<1x8x32xf32, #tpu.memory_space<vmem>>) attributes {dimension_semantics = [#tpu.dimension_semantics<parallel>], iteration_bounds = array<i64: 2>, scalar_prefetch = 0 : i64, scratch_operands = 0 : i64, tpu.core_type = #tpu.core_type<tc>, window_params = [{transform_indices = @transform_0, window_bounds = array<i64: 1, 8, 32>}, {pipeline_mode = #tpu.pipeline_mode<synchronous>, transform_indices = @transform_1, window_bounds = array<i64: 32, 96>}, {pipeline_mode = #tpu.pipeline_mode<synchronous>, transform_indices = @transform_2, window_bounds = array<i64: 1, 96>}, {pipeline_mode = #tpu.pipeline_mode<synchronous>, transform_indices = @transform_3, window_bounds = array<i64: 32, 32>}, {pipeline_mode = #tpu.pipeline_mode<synchronous>, transform_indices = @transform_4, window_bounds = array<i64: 1, 32>}, {transform_indices = @transform_5, window_bounds = array<i64: 1, 8, 32>}]} {
    %c0 = arith.constant 0 : index
    %c0_0 = arith.constant 0 : index
    %c0_1 = arith.constant 0 : index
    %0 = vector.load %arg1[%c0, %c0_0, %c0_1] : memref<1x8x32xf32, #tpu.memory_space<vmem>>, vector<1x8x32xf32>
    %1 = vector.shape_cast %0 : vector<1x8x32xf32> to vector<8x32xf32>
    %c0_2 = arith.constant 0 : index
    %c0_3 = arith.constant 0 : index
    %2 = vector.load %arg2[%c0_2, %c0_3] : memref<32x96xf32, #tpu.memory_space<vmem>>, vector<32x96xf32>
    %cst = arith.constant dense<0.000000e+00> : vector<8x96xf32>
    %3 = tpu.matmul %1, %2, %cst {dimension_numbers = #tpu.dot_dimension_numbers<[1], [0], [0], [1], [0, 0, 1, 1], [], []>} : vector<8x32xf32>, vector<32x96xf32>, vector<8x96xf32> -> vector<8x96xf32>
    %c0_4 = arith.constant 0 : index
    %c0_5 = arith.constant 0 : index
    %4 = vector.load %arg3[%c0_4, %c0_5] : memref<1x96xf32, #tpu.memory_space<vmem>>, vector<1x96xf32>
    %5 = vector.broadcast %4 : vector<1x96xf32> to vector<8x96xf32>
    %6 = arith.addf %3, %5 : vector<8x96xf32>
    %7 = vector.shape_cast %6 : vector<8x96xf32> to vector<1x8x96xf32>
    %8 = tpu.iota {dimensions = array<i32: 0>} : vector<8x8xi32>
    %9 = tpu.iota {dimensions = array<i32: 1>} : vector<8x8xi32>
    %10 = arith.cmpi sle, %9, %8 : vector<8x8xi32>
    %11 = vector.shape_cast %10 : vector<8x8xi1> to vector<1x8x8xi1>
    %12 = vector.extract_strided_slice %7 {offsets = [0, 0, 0], sizes = [1, 8, 8], strides = [1, 1, 1]} : vector<1x8x96xf32> to vector<1x8x8xf32>
    %13 = vector.extract_strided_slice %7 {offsets = [0, 0, 32], sizes = [1, 8, 8], strides = [1, 1, 1]} : vector<1x8x96xf32> to vector<1x8x8xf32>
    %14 = vector.extract_strided_slice %7 {offsets = [0, 0, 64], sizes = [1, 8, 8], strides = [1, 1, 1]} : vector<1x8x96xf32> to vector<1x8x8xf32>
    "tpu.trace_start"() <{level = 10 : i32, message = "bqd,bkd->bqk"}> : () -> ()
    %cst_6 = arith.constant dense<0.000000e+00> : vector<1x8x8xf32>
    %15 = tpu.matmul %12, %13, %cst_6 {dimension_numbers = #tpu.dot_dimension_numbers<[2], [2], [1], [1], [0, 0, 0, 1, 1, 1], [0], [0]>} : vector<1x8x8xf32>, vector<1x8x8xf32>, vector<1x8x8xf32> -> vector<1x8x8xf32>
    %cst_7 = arith.constant -1.000000e+30 : f32
    "tpu.trace_stop"() : () -> ()
    %16 = vector.broadcast %cst_7 : f32 to vector<1x8x8xf32>
    %17 = arith.select %11, %15, %16 : vector<1x8x8xi1>, vector<1x8x8xf32>
    %cst_8 = arith.constant dense<0xFF800000> : vector<1x8xf32>
    %18 = vector.multi_reduction <maximumf>, %17, %cst_8 [2] : vector<1x8x8xf32> to vector<1x8xf32>
    %19 = vector.shape_cast %18 : vector<1x8xf32> to vector<1x8x1xf32>
    %20 = vector.broadcast %19 : vector<1x8x1xf32> to vector<1x8x8xf32>
    %21 = arith.subf %17, %20 : vector<1x8x8xf32>
    %22 = math.exp %21 : vector<1x8x8xf32>
    %cst_9 = arith.constant dense<0.000000e+00> : vector<1x8xf32>
    %23 = vector.multi_reduction <add>, %22, %cst_9 [2] : vector<1x8x8xf32> to vector<1x8xf32>
    %24 = vector.shape_cast %23 : vector<1x8xf32> to vector<1x8x1xf32>
    "tpu.trace_start"() <{level = 10 : i32, message = "bqk,bkd->bqd"}> : () -> ()
    %cst_10 = arith.constant dense<0.000000e+00> : vector<1x8x8xf32>
    %25 = tpu.matmul %22, %14, %cst_10 {dimension_numbers = #tpu.dot_dimension_numbers<[2], [1], [1], [2], [0, 0, 0, 1, 1, 2], [0], [0]>} : vector<1x8x8xf32>, vector<1x8x8xf32>, vector<1x8x8xf32> -> vector<1x8x8xf32>
    "tpu.trace_stop"() : () -> ()
    %26 = tpu.reciprocal %24 {approx = true} : vector<1x8x1xf32> -> vector<1x8x1xf32>
    %27 = vector.broadcast %26 : vector<1x8x1xf32> to vector<1x8x8xf32>
    %28 = arith.mulf %25, %27 : vector<1x8x8xf32>
    %29 = vector.extract_strided_slice %7 {offsets = [0, 0, 8], sizes = [1, 8, 8], strides = [1, 1, 1]} : vector<1x8x96xf32> to vector<1x8x8xf32>
    %30 = vector.extract_strided_slice %7 {offsets = [0, 0, 40], sizes = [1, 8, 8], strides = [1, 1, 1]} : vector<1x8x96xf32> to vector<1x8x8xf32>
    %31 = vector.extract_strided_slice %7 {offsets = [0, 0, 72], sizes = [1, 8, 8], strides = [1, 1, 1]} : vector<1x8x96xf32> to vector<1x8x8xf32>
    "tpu.trace_start"() <{level = 10 : i32, message = "bqd,bkd->bqk"}> : () -> ()
    %cst_11 = arith.constant dense<0.000000e+00> : vector<1x8x8xf32>
    %32 = tpu.matmul %29, %30, %cst_11 {dimension_numbers = #tpu.dot_dimension_numbers<[2], [2], [1], [1], [0, 0, 0, 1, 1, 1], [0], [0]>} : vector<1x8x8xf32>, vector<1x8x8xf32>, vector<1x8x8xf32> -> vector<1x8x8xf32>
    %cst_12 = arith.constant -1.000000e+30 : f32
    "tpu.trace_stop"() : () -> ()
    %33 = vector.broadcast %cst_12 : f32 to vector<1x8x8xf32>
    %34 = arith.select %11, %32, %33 : vector<1x8x8xi1>, vector<1x8x8xf32>
    %cst_13 = arith.constant dense<0xFF800000> : vector<1x8xf32>
    %35 = vector.multi_reduction <maximumf>, %34, %cst_13 [2] : vector<1x8x8xf32> to vector<1x8xf32>
    %36 = vector.shape_cast %35 : vector<1x8xf32> to vector<1x8x1xf32>
    %37 = vector.broadcast %36 : vector<1x8x1xf32> to vector<1x8x8xf32>
    %38 = arith.subf %34, %37 : vector<1x8x8xf32>
    %39 = math.exp %38 : vector<1x8x8xf32>
    %cst_14 = arith.constant dense<0.000000e+00> : vector<1x8xf32>
    %40 = vector.multi_reduction <add>, %39, %cst_14 [2] : vector<1x8x8xf32> to vector<1x8xf32>
    %41 = vector.shape_cast %40 : vector<1x8xf32> to vector<1x8x1xf32>
    "tpu.trace_start"() <{level = 10 : i32, message = "bqk,bkd->bqd"}> : () -> ()
    %cst_15 = arith.constant dense<0.000000e+00> : vector<1x8x8xf32>
    %42 = tpu.matmul %39, %31, %cst_15 {dimension_numbers = #tpu.dot_dimension_numbers<[2], [1], [1], [2], [0, 0, 0, 1, 1, 2], [0], [0]>} : vector<1x8x8xf32>, vector<1x8x8xf32>, vector<1x8x8xf32> -> vector<1x8x8xf32>
    "tpu.trace_stop"() : () -> ()
    %43 = tpu.reciprocal %41 {approx = true} : vector<1x8x1xf32> -> vector<1x8x1xf32>
    %44 = vector.broadcast %43 : vector<1x8x1xf32> to vector<1x8x8xf32>
    %45 = arith.mulf %42, %44 : vector<1x8x8xf32>
    %46 = vector.extract_strided_slice %7 {offsets = [0, 0, 16], sizes = [1, 8, 8], strides = [1, 1, 1]} : vector<1x8x96xf32> to vector<1x8x8xf32>
    %47 = vector.extract_strided_slice %7 {offsets = [0, 0, 48], sizes = [1, 8, 8], strides = [1, 1, 1]} : vector<1x8x96xf32> to vector<1x8x8xf32>
    %48 = vector.extract_strided_slice %7 {offsets = [0, 0, 80], sizes = [1, 8, 8], strides = [1, 1, 1]} : vector<1x8x96xf32> to vector<1x8x8xf32>
    "tpu.trace_start"() <{level = 10 : i32, message = "bqd,bkd->bqk"}> : () -> ()
    %cst_16 = arith.constant dense<0.000000e+00> : vector<1x8x8xf32>
    %49 = tpu.matmul %46, %47, %cst_16 {dimension_numbers = #tpu.dot_dimension_numbers<[2], [2], [1], [1], [0, 0, 0, 1, 1, 1], [0], [0]>} : vector<1x8x8xf32>, vector<1x8x8xf32>, vector<1x8x8xf32> -> vector<1x8x8xf32>
    %cst_17 = arith.constant -1.000000e+30 : f32
    "tpu.trace_stop"() : () -> ()
    %50 = vector.broadcast %cst_17 : f32 to vector<1x8x8xf32>
    %51 = arith.select %11, %49, %50 : vector<1x8x8xi1>, vector<1x8x8xf32>
    %cst_18 = arith.constant dense<0xFF800000> : vector<1x8xf32>
    %52 = vector.multi_reduction <maximumf>, %51, %cst_18 [2] : vector<1x8x8xf32> to vector<1x8xf32>
    %53 = vector.shape_cast %52 : vector<1x8xf32> to vector<1x8x1xf32>
    %54 = vector.broadcast %53 : vector<1x8x1xf32> to vector<1x8x8xf32>
    %55 = arith.subf %51, %54 : vector<1x8x8xf32>
    %56 = math.exp %55 : vector<1x8x8xf32>
    %cst_19 = arith.constant dense<0.000000e+00> : vector<1x8xf32>
    %57 = vector.multi_reduction <add>, %56, %cst_19 [2] : vector<1x8x8xf32> to vector<1x8xf32>
    %58 = vector.shape_cast %57 : vector<1x8xf32> to vector<1x8x1xf32>
    "tpu.trace_start"() <{level = 10 : i32, message = "bqk,bkd->bqd"}> : () -> ()
    %cst_20 = arith.constant dense<0.000000e+00> : vector<1x8x8xf32>
    %59 = tpu.matmul %56, %48, %cst_20 {dimension_numbers = #tpu.dot_dimension_numbers<[2], [1], [1], [2], [0, 0, 0, 1, 1, 2], [0], [0]>} : vector<1x8x8xf32>, vector<1x8x8xf32>, vector<1x8x8xf32> -> vector<1x8x8xf32>
    "tpu.trace_stop"() : () -> ()
    %60 = tpu.reciprocal %58 {approx = true} : vector<1x8x1xf32> -> vector<1x8x1xf32>
    %61 = vector.broadcast %60 : vector<1x8x1xf32> to vector<1x8x8xf32>
    %62 = arith.mulf %59, %61 : vector<1x8x8xf32>
    %63 = vector.extract_strided_slice %7 {offsets = [0, 0, 24], sizes = [1, 8, 8], strides = [1, 1, 1]} : vector<1x8x96xf32> to vector<1x8x8xf32>
    %64 = vector.extract_strided_slice %7 {offsets = [0, 0, 56], sizes = [1, 8, 8], strides = [1, 1, 1]} : vector<1x8x96xf32> to vector<1x8x8xf32>
    %65 = vector.extract_strided_slice %7 {offsets = [0, 0, 88], sizes = [1, 8, 8], strides = [1, 1, 1]} : vector<1x8x96xf32> to vector<1x8x8xf32>
    "tpu.trace_start"() <{level = 10 : i32, message = "bqd,bkd->bqk"}> : () -> ()
    %cst_21 = arith.constant dense<0.000000e+00> : vector<1x8x8xf32>
    %66 = tpu.matmul %63, %64, %cst_21 {dimension_numbers = #tpu.dot_dimension_numbers<[2], [2], [1], [1], [0, 0, 0, 1, 1, 1], [0], [0]>} : vector<1x8x8xf32>, vector<1x8x8xf32>, vector<1x8x8xf32> -> vector<1x8x8xf32>
    %cst_22 = arith.constant -1.000000e+30 : f32
    "tpu.trace_stop"() : () -> ()
    %67 = vector.broadcast %cst_22 : f32 to vector<1x8x8xf32>
    %68 = arith.select %11, %66, %67 : vector<1x8x8xi1>, vector<1x8x8xf32>
    %cst_23 = arith.constant dense<0xFF800000> : vector<1x8xf32>
    %69 = vector.multi_reduction <maximumf>, %68, %cst_23 [2] : vector<1x8x8xf32> to vector<1x8xf32>
    %70 = vector.shape_cast %69 : vector<1x8xf32> to vector<1x8x1xf32>
    %71 = vector.broadcast %70 : vector<1x8x1xf32> to vector<1x8x8xf32>
    %72 = arith.subf %68, %71 : vector<1x8x8xf32>
    %73 = math.exp %72 : vector<1x8x8xf32>
    %cst_24 = arith.constant dense<0.000000e+00> : vector<1x8xf32>
    %74 = vector.multi_reduction <add>, %73, %cst_24 [2] : vector<1x8x8xf32> to vector<1x8xf32>
    %75 = vector.shape_cast %74 : vector<1x8xf32> to vector<1x8x1xf32>
    "tpu.trace_start"() <{level = 10 : i32, message = "bqk,bkd->bqd"}> : () -> ()
    %cst_25 = arith.constant dense<0.000000e+00> : vector<1x8x8xf32>
    %76 = tpu.matmul %73, %65, %cst_25 {dimension_numbers = #tpu.dot_dimension_numbers<[2], [1], [1], [2], [0, 0, 0, 1, 1, 2], [0], [0]>} : vector<1x8x8xf32>, vector<1x8x8xf32>, vector<1x8x8xf32> -> vector<1x8x8xf32>
    "tpu.trace_stop"() : () -> ()
    %77 = tpu.reciprocal %75 {approx = true} : vector<1x8x1xf32> -> vector<1x8x1xf32>
    %78 = vector.broadcast %77 : vector<1x8x1xf32> to vector<1x8x8xf32>
    %79 = arith.mulf %76, %78 : vector<1x8x8xf32>
    %80 = tpu.concatenate %28, %45, %62, %79 in 2 : vector<1x8x8xf32>, vector<1x8x8xf32>, vector<1x8x8xf32>, vector<1x8x8xf32> -> vector<1x8x32xf32>
    %81 = vector.shape_cast %80 : vector<1x8x32xf32> to vector<8x32xf32>
    %c0_26 = arith.constant 0 : index
    %c0_27 = arith.constant 0 : index
    %82 = vector.load %arg4[%c0_26, %c0_27] : memref<32x32xf32, #tpu.memory_space<vmem>>, vector<32x32xf32>
    %cst_28 = arith.constant dense<0.000000e+00> : vector<8x32xf32>
    %83 = tpu.matmul %81, %82, %cst_28 {dimension_numbers = #tpu.dot_dimension_numbers<[1], [0], [0], [1], [0, 0, 1, 1], [], []>} : vector<8x32xf32>, vector<32x32xf32>, vector<8x32xf32> -> vector<8x32xf32>
    %c0_29 = arith.constant 0 : index
    %c0_30 = arith.constant 0 : index
    %84 = vector.load %arg5[%c0_29, %c0_30] : memref<1x32xf32, #tpu.memory_space<vmem>>, vector<1x32xf32>
    %85 = vector.broadcast %84 : vector<1x32xf32> to vector<8x32xf32>
    %86 = arith.addf %83, %85 : vector<8x32xf32>
    %87 = vector.shape_cast %86 : vector<8x32xf32> to vector<1x8x32xf32>
    %c0_31 = arith.constant 0 : index
    %c0_32 = arith.constant 0 : index
    %c0_33 = arith.constant 0 : index
    %88 = vector.load %arg6[%c0_31, %c0_32, %c0_33] : memref<1x8x32xf32, #tpu.memory_space<vmem>>, vector<1x8x32xf32>
    tpu.vector_store %arg6[%c0_31, %c0_32, %c0_33], %87 {strides = array<i32>} : memref<1x8x32xf32, #tpu.memory_space<vmem>>, vector<1x8x32xf32>,
    return
  }
  func.func @transform_0(%arg0: i32) -> (i32, i32, i32) {
    %c0_i32 = arith.constant 0 : i32
    %c0_i32_0 = arith.constant 0 : i32
    %c0_i32_1 = arith.constant 0 : i32
    return %arg0, %c0_i32, %c0_i32_0 : i32, i32, i32
  }
  func.func @transform_1(%arg0: i32) -> (i32, i32) {
    %c0_i32 = arith.constant 0 : i32
    %c0_i32_0 = arith.constant 0 : i32
    %c0_i32_1 = arith.constant 0 : i32
    return %c0_i32, %c0_i32_0 : i32, i32
  }
  func.func @transform_2(%arg0: i32) -> (i32, i32) {
    %c0_i32 = arith.constant 0 : i32
    %c0_i32_0 = arith.constant 0 : i32
    %c0_i32_1 = arith.constant 0 : i32
    return %c0_i32, %c0_i32_0 : i32, i32
  }
  func.func @transform_3(%arg0: i32) -> (i32, i32) {
    %c0_i32 = arith.constant 0 : i32
    %c0_i32_0 = arith.constant 0 : i32
    %c0_i32_1 = arith.constant 0 : i32
    return %c0_i32, %c0_i32_0 : i32, i32
  }
  func.func @transform_4(%arg0: i32) -> (i32, i32) {
    %c0_i32 = arith.constant 0 : i32
    %c0_i32_0 = arith.constant 0 : i32
    %c0_i32_1 = arith.constant 0 : i32
    return %c0_i32, %c0_i32_0 : i32, i32
  }
  func.func @transform_5(%arg0: i32) -> (i32, i32, i32) {
    %c0_i32 = arith.constant 0 : i32
    %c0_i32_0 = arith.constant 0 : i32
    %c0_i32_1 = arith.constant 0 : i32
    return %arg0, %c0_i32, %c0_i32_0 : i32, i32, i32
  }
}

module attributes {stable_mosaic.version = 11 : i64} {
  func.func @mha_kernel(%arg0: i32, %arg1: memref<1x8x32xf32, #tpu.memory_space<vmem>>, %arg2: memref<32x96xf32, #tpu.memory_space<vmem>>, %arg3: memref<1x96xf32, #tpu.memory_space<vmem>>, %arg4: memref<32x32xf32, #tpu.memory_space<vmem>>, %arg5: memref<1x32xf32, #tpu.memory_space<vmem>>, %arg6: memref<1x8x32xf32, #tpu.memory_space<vmem>>) attributes {dimension_semantics = [#tpu.dimension_semantics<parallel>], iteration_bounds = array<i64: 2>, scalar_prefetch = 0 : i64, scratch_operands = 0 : i64, tpu.core_type = #tpu.core_type<tc>, window_params = [{transform_indices = @transform_0, window_bounds = array<i64: 1, 8, 32>}, {pipeline_mode = #tpu.pipeline_mode<synchronous>, transform_indices = @transform_1, window_bounds = array<i64: 32, 96>}, {pipeline_mode = #tpu.pipeline_mode<synchronous>, transform_indices = @transform_2, window_bounds = array<i64: 1, 96>}, {pipeline_mode = #tpu.pipeline_mode<synchronous>, transform_indices = @transform_3, window_bounds = array<i64: 32, 32>}, {pipeline_mode = #tpu.pipeline_mode<synchronous>, transform_indices = @transform_4, window_bounds = array<i64: 1, 32>}, {transform_indices = @transform_5, window_bounds = array<i64: 1, 8, 32>}]} {
    %c0 = arith.constant 0 : index
    %c0_0 = arith.constant 0 : index
    %c0_1 = arith.constant 0 : index
    %0 = vector.load %arg1[%c0, %c0_0, %c0_1] : memref<1x8x32xf32, #tpu.memory_space<vmem>>, vector<1x8x32xf32>
    %1 = vector.shape_cast %0 : vector<1x8x32xf32> to vector<8x32xf32>
    %c0_2 = arith.constant 0 : index
    %c0_3 = arith.constant 0 : index
    %2 = vector.load %arg2[%c0_2, %c0_3] : memref<32x96xf32, #tpu.memory_space<vmem>>, vector<32x96xf32>
    %cst = arith.constant dense<0.000000e+00> : vector<8x96xf32>
    %3 = tpu.matmul %1, %2, %cst {dimension_numbers = #tpu.dot_dimension_numbers<[1], [0], [0], [1], [0, 0, 1, 1], [], []>} : vector<8x32xf32>, vector<32x96xf32>, vector<8x96xf32> -> vector<8x96xf32>
    %c0_4 = arith.constant 0 : index
    %c0_5 = arith.constant 0 : index
    %4 = vector.load %arg3[%c0_4, %c0_5] : memref<1x96xf32, #tpu.memory_space<vmem>>, vector<1x96xf32>
    %5 = vector.broadcast %4 : vector<1x96xf32> to vector<8x96xf32>
    %6 = arith.addf %3, %5 : vector<8x96xf32>
    %7 = vector.shape_cast %6 : vector<8x96xf32> to vector<1x8x96xf32>
    %8 = tpu.iota {dimensions = array<i32: 0>} : vector<8x8xi32>
    %9 = tpu.iota {dimensions = array<i32: 1>} : vector<8x8xi32>
    %10 = arith.cmpi sle, %9, %8 : vector<8x8xi32>
    %11 = vector.shape_cast %10 : vector<8x8xi1> to vector<1x8x8xi1>
    %12 = vector.extract_strided_slice %7 {offsets = [0, 0, 0], sizes = [1, 8, 8], strides = [1, 1, 1]} : vector<1x8x96xf32> to vector<1x8x8xf32>
    %13 = vector.extract_strided_slice %7 {offsets = [0, 0, 32], sizes = [1, 8, 8], strides = [1, 1, 1]} : vector<1x8x96xf32> to vector<1x8x8xf32>
    %14 = vector.extract_strided_slice %7 {offsets = [0, 0, 64], sizes = [1, 8, 8], strides = [1, 1, 1]} : vector<1x8x96xf32> to vector<1x8x8xf32>
    "tpu.trace_start"() <{level = 10 : i32, message = "bqd,bkd->bqk"}> : () -> ()
    %cst_6 = arith.constant dense<0.000000e+00> : vector<1x8x8xf32>
    %15 = tpu.matmul %12, %13, %cst_6 {dimension_numbers = #tpu.dot_dimension_numbers<[2], [2], [1], [1], [0, 0, 0, 1, 1, 1], [0], [0]>} : vector<1x8x8xf32>, vector<1x8x8xf32>, vector<1x8x8xf32> -> vector<1x8x8xf32>
    %cst_7 = arith.constant -1.000000e+30 : f32
    "tpu.trace_stop"() : () -> ()
    %16 = vector.broadcast %cst_7 : f32 to vector<1x8x8xf32>
    %17 = arith.select %11, %15, %16 : vector<1x8x8xi1>, vector<1x8x8xf32>
    %cst_8 = arith.constant dense<0xFF800000> : vector<1x8xf32>
    %18 = vector.multi_reduction <maximumf>, %17, %cst_8 [2] : vector<1x8x8xf32> to vector<1x8xf32>
    %19 = vector.shape_cast %18 : vector<1x8xf32> to vector<1x8x1xf32>
    %20 = vector.broadcast %19 : vector<1x8x1xf32> to vector<1x8x8xf32>
    %21 = arith.subf %17, %20 : vector<1x8x8xf32>
    %22 = math.exp %21 : vector<1x8x8xf32>
    %cst_9 = arith.constant dense<0.000000e+00> : vector<1x8xf32>
    %23 = vector.multi_reduction <add>, %22, %cst_9 [2] : vector<1x8x8xf32> to vector<1x8xf32>
    %24 = vector.shape_cast %23 : vector<1x8xf32> to vector<1x8x1xf32>
    "tpu.trace_start"() <{level = 10 : i32, message = "bqk,bkd->bqd"}> : () -> ()
    %cst_10 = arith.constant dense<0.000000e+00> : vector<1x8x8xf32>
    %25 = tpu.matmul %22, %14, %cst_10 {dimension_numbers = #tpu.dot_dimension_numbers<[2], [1], [1], [2], [0, 0, 0, 1, 1, 2], [0], [0]>} : vector<1x8x8xf32>, vector<1x8x8xf32>, vector<1x8x8xf32> -> vector<1x8x8xf32>
    "tpu.trace_stop"() : () -> ()
    %26 = tpu.reciprocal %24 {approx = true} : vector<1x8x1xf32> -> vector<1x8x1xf32>
    %27 = vector.broadcast %26 : vector<1x8x1xf32> to vector<1x8x8xf32>
    %28 = arith.mulf %25, %27 : vector<1x8x8xf32>
    %29 = vector.extract_strided_slice %7 {offsets = [0, 0, 8], sizes = [1, 8, 8], strides = [1, 1, 1]} : vector<1x8x96xf32> to vector<1x8x8xf32>
    %30 = vector.extract_strided_slice %7 {offsets = [0, 0, 40], sizes = [1, 8, 8], strides = [1, 1, 1]} : vector<1x8x96xf32> to vector<1x8x8xf32>
    %31 = vector.extract_strided_slice %7 {offsets = [0, 0, 72], sizes = [1, 8, 8], strides = [1, 1, 1]} : vector<1x8x96xf32> to vector<1x8x8xf32>
    "tpu.trace_start"() <{level = 10 : i32, message = "bqd,bkd->bqk"}> : () -> ()
    %cst_11 = arith.constant dense<0.000000e+00> : vector<1x8x8xf32>
    %32 = tpu.matmul %29, %30, %cst_11 {dimension_numbers = #tpu.dot_dimension_numbers<[2], [2], [1], [1], [0, 0, 0, 1, 1, 1], [0], [0]>} : vector<1x8x8xf32>, vector<1x8x8xf32>, vector<1x8x8xf32> -> vector<1x8x8xf32>
    %cst_12 = arith.constant -1.000000e+30 : f32
    "tpu.trace_stop"() : () -> ()
    %33 = vector.broadcast %cst_12 : f32 to vector<1x8x8xf32>
    %34 = arith.select %11, %32, %33 : vector<1x8x8xi1>, vector<1x8x8xf32>
    %cst_13 = arith.constant dense<0xFF800000> : vector<1x8xf32>
    %35 = vector.multi_reduction <maximumf>, %34, %cst_13 [2] : vector<1x8x8xf32> to vector<1x8xf32>
    %36 = vector.shape_cast %35 : vector<1x8xf32> to vector<1x8x1xf32>
    %37 = vector.broadcast %36 : vector<1x8x1xf32> to vector<1x8x8xf32>
    %38 = arith.subf %34, %37 : vector<1x8x8xf32>
    %39 = math.exp %38 : vector<1x8x8xf32>
    %cst_14 = arith.constant dense<0.000000e+00> : vector<1x8xf32>
    %40 = vector.multi_reduction <add>, %39, %cst_14 [2] : vector<1x8x8xf32> to vector<1x8xf32>
    %41 = vector.shape_cast %40 : vector<1x8xf32> to vector<1x8x1xf32>
    "tpu.trace_start"() <{level = 10 : i32, message = "bqk,bkd->bqd"}> : () -> ()
    %cst_15 = arith.constant dense<0.000000e+00> : vector<1x8x8xf32>
    %42 = tpu.matmul %39, %31, %cst_15 {dimension_numbers = #tpu.dot_dimension_numbers<[2], [1], [1], [2], [0, 0, 0, 1, 1, 2], [0], [0]>} : vector<1x8x8xf32>, vector<1x8x8xf32>, vector<1x8x8xf32> -> vector<1x8x8xf32>
    "tpu.trace_stop"() : () -> ()
    %43 = tpu.reciprocal %41 {approx = true} : vector<1x8x1xf32> -> vector<1x8x1xf32>
    %44 = vector.broadcast %43 : vector<1x8x1xf32> to vector<1x8x8xf32>
    %45 = arith.mulf %42, %44 : vector<1x8x8xf32>
    %46 = vector.extract_strided_slice %7 {offsets = [0, 0, 16], sizes = [1, 8, 8], strides = [1, 1, 1]} : vector<1x8x96xf32> to vector<1x8x8xf32>
    %47 = vector.extract_strided_slice %7 {offsets = [0, 0, 48], sizes = [1, 8, 8], strides = [1, 1, 1]} : vector<1x8x96xf32> to vector<1x8x8xf32>
    %48 = vector.extract_strided_slice %7 {offsets = [0, 0, 80], sizes = [1, 8, 8], strides = [1, 1, 1]} : vector<1x8x96xf32> to vector<1x8x8xf32>
    "tpu.trace_start"() <{level = 10 : i32, message = "bqd,bkd->bqk"}> : () -> ()
    %cst_16 = arith.constant dense<0.000000e+00> : vector<1x8x8xf32>
    %49 = tpu.matmul %46, %47, %cst_16 {dimension_numbers = #tpu.dot_dimension_numbers<[2], [2], [1], [1], [0, 0, 0, 1, 1, 1], [0], [0]>} : vector<1x8x8xf32>, vector<1x8x8xf32>, vector<1x8x8xf32> -> vector<1x8x8xf32>
    %cst_17 = arith.constant -1.000000e+30 : f32
    "tpu.trace_stop"() : () -> ()
    %50 = vector.broadcast %cst_17 : f32 to vector<1x8x8xf32>
    %51 = arith.select %11, %49, %50 : vector<1x8x8xi1>, vector<1x8x8xf32>
    %cst_18 = arith.constant dense<0xFF800000> : vector<1x8xf32>
    %52 = vector.multi_reduction <maximumf>, %51, %cst_18 [2] : vector<1x8x8xf32> to vector<1x8xf32>
    %53 = vector.shape_cast %52 : vector<1x8xf32> to vector<1x8x1xf32>
    %54 = vector.broadcast %53 : vector<1x8x1xf32> to vector<1x8x8xf32>
    %55 = arith.subf %51, %54 : vector<1x8x8xf32>
    %56 = math.exp %55 : vector<1x8x8xf32>
    %cst_19 = arith.constant dense<0.000000e+00> : vector<1x8xf32>
    %57 = vector.multi_reduction <add>, %56, %cst_19 [2] : vector<1x8x8xf32> to vector<1x8xf32>
    %58 = vector.shape_cast %57 : vector<1x8xf32> to vector<1x8x1xf32>
    "tpu.trace_start"() <{level = 10 : i32, message = "bqk,bkd->bqd"}> : () -> ()
    %cst_20 = arith.constant dense<0.000000e+00> : vector<1x8x8xf32>
    %59 = tpu.matmul %56, %48, %cst_20 {dimension_numbers = #tpu.dot_dimension_numbers<[2], [1], [1], [2], [0, 0, 0, 1, 1, 2], [0], [0]>} : vector<1x8x8xf32>, vector<1x8x8xf32>, vector<1x8x8xf32> -> vector<1x8x8xf32>
    "tpu.trace_stop"() : () -> ()
    %60 = tpu.reciprocal %58 {approx = true} : vector<1x8x1xf32> -> vector<1x8x1xf32>
    %61 = vector.broadcast %60 : vector<1x8x1xf32> to vector<1x8x8xf32>
    %62 = arith.mulf %59, %61 : vector<1x8x8xf32>
    %63 = vector.extract_strided_slice %7 {offsets = [0, 0, 24], sizes = [1, 8, 8], strides = [1, 1, 1]} : vector<1x8x96xf32> to vector<1x8x8xf32>
    %64 = vector.extract_strided_slice %7 {offsets = [0, 0, 56], sizes = [1, 8, 8], strides = [1, 1, 1]} : vector<1x8x96xf32> to vector<1x8x8xf32>
    %65 = vector.extract_strided_slice %7 {offsets = [0, 0, 88], sizes = [1, 8, 8], strides = [1, 1, 1]} : vector<1x8x96xf32> to vector<1x8x8xf32>
    "tpu.trace_start"() <{level = 10 : i32, message = "bqd,bkd->bqk"}> : () -> ()
    %cst_21 = arith.constant dense<0.000000e+00> : vector<1x8x8xf32>
    %66 = tpu.matmul %63, %64, %cst_21 {dimension_numbers = #tpu.dot_dimension_numbers<[2], [2], [1], [1], [0, 0, 0, 1, 1, 1], [0], [0]>} : vector<1x8x8xf32>, vector<1x8x8xf32>, vector<1x8x8xf32> -> vector<1x8x8xf32>
    %cst_22 = arith.constant -1.000000e+30 : f32
    "tpu.trace_stop"() : () -> ()
    %67 = vector.broadcast %cst_22 : f32 to vector<1x8x8xf32>
    %68 = arith.select %11, %66, %67 : vector<1x8x8xi1>, vector<1x8x8xf32>
    %cst_23 = arith.constant dense<0xFF800000> : vector<1x8xf32>
    %69 = vector.multi_reduction <maximumf>, %68, %cst_23 [2] : vector<1x8x8xf32> to vector<1x8xf32>
    %70 = vector.shape_cast %69 : vector<1x8xf32> to vector<1x8x1xf32>
    %71 = vector.broadcast %70 : vector<1x8x1xf32> to vector<1x8x8xf32>
    %72 = arith.subf %68, %71 : vector<1x8x8xf32>
    %73 = math.exp %72 : vector<1x8x8xf32>
    %cst_24 = arith.constant dense<0.000000e+00> : vector<1x8xf32>
    %74 = vector.multi_reduction <add>, %73, %cst_24 [2] : vector<1x8x8xf32> to vector<1x8xf32>
    %75 = vector.shape_cast %74 : vector<1x8xf32> to vector<1x8x1xf32>
    "tpu.trace_start"() <{level = 10 : i32, message = "bqk,bkd->bqd"}> : () -> ()
    %cst_25 = arith.constant dense<0.000000e+00> : vector<1x8x8xf32>
    %76 = tpu.matmul %73, %65, %cst_25 {dimension_numbers = #tpu.dot_dimension_numbers<[2], [1], [1], [2], [0, 0, 0, 1, 1, 2], [0], [0]>} : vector<1x8x8xf32>, vector<1x8x8xf32>, vector<1x8x8xf32> -> vector<1x8x8xf32>
    "tpu.trace_stop"() : () -> ()
    %77 = tpu.reciprocal %75 {approx = true} : vector<1x8x1xf32> -> vector<1x8x1xf32>
    %78 = vector.broadcast %77 : vector<1x8x1xf32> to vector<1x8x8xf32>
    %79 = arith.mulf %76, %78 : vector<1x8x8xf32>
    %80 = tpu.concatenate %28, %45, %62, %79 in 2 : vector<1x8x8xf32>, vector<1x8x8xf32>, vector<1x8x8xf32>, vector<1x8x8xf32> -> vector<1x8x32xf32>
    %81 = vector.shape_cast %80 : vector<1x8x32xf32> to vector<8x32xf32>
    %c0_26 = arith.constant 0 : index
    %c0_27 = arith.constant 0 : index
    %82 = vector.load %arg4[%c0_26, %c0_27] : memref<32x32xf32, #tpu.memory_space<vmem>>, vector<32x32xf32>
    %cst_28 = arith.constant dense<0.000000e+00> : vector<8x32xf32>
    %83 = tpu.matmul %81, %82, %cst_28 {dimension_numbers = #tpu.dot_dimension_numbers<[1], [0], [0], [1], [0, 0, 1, 1], [], []>} : vector<8x32xf32>, vector<32x32xf32>, vector<8x32xf32> -> vector<8x32xf32>
    %c0_29 = arith.constant 0 : index
    %c0_30 = arith.constant 0 : index
    %84 = vector.load %arg5[%c0_29, %c0_30] : memref<1x32xf32, #tpu.memory_space<vmem>>, vector<1x32xf32>
    %85 = vector.broadcast %84 : vector<1x32xf32> to vector<8x32xf32>
    %86 = arith.addf %83, %85 : vector<8x32xf32>
    %87 = vector.shape_cast %86 : vector<8x32xf32> to vector<1x8x32xf32>
    %c0_31 = arith.constant 0 : index
    %c0_32 = arith.constant 0 : index
    %c0_33 = arith.constant 0 : index
    %88 = vector.load %arg6[%c0_31, %c0_32, %c0_33] : memref<1x8x32xf32, #tpu.memory_space<vmem>>, vector<1x8x32xf32>
    tpu.vector_store %arg6[%c0_31, %c0_32, %c0_33], %87 {strides = array<i32>} : memref<1x8x32xf32, #tpu.memory_space<vmem>>, vector<1x8x32xf32>,
    return
  }
  func.func @transform_0(%arg0: i32) -> (i32, i32, i32) {
    %c0_i32 = arith.constant 0 : i32
    %c0_i32_0 = arith.constant 0 : i32
    %c0_i32_1 = arith.constant 0 : i32
    return %arg0, %c0_i32, %c0_i32_0 : i32, i32, i32
  }
  func.func @transform_1(%arg0: i32) -> (i32, i32) {
    %c0_i32 = arith.constant 0 : i32
    %c0_i32_0 = arith.constant 0 : i32
    %c0_i32_1 = arith.constant 0 : i32
    return %c0_i32, %c0_i32_0 : i32, i32
  }
  func.func @transform_2(%arg0: i32) -> (i32, i32) {
    %c0_i32 = arith.constant 0 : i32
    %c0_i32_0 = arith.constant 0 : i32
    %c0_i32_1 = arith.constant 0 : i32
    return %c0_i32, %c0_i32_0 : i32, i32
  }
  func.func @transform_3(%arg0: i32) -> (i32, i32) {
    %c0_i32 = arith.constant 0 : i32
    %c0_i32_0 = arith.constant 0 : i32
    %c0_i32_1 = arith.constant 0 : i32
    return %c0_i32, %c0_i32_0 : i32, i32
  }
  func.func @transform_4(%arg0: i32) -> (i32, i32) {
    %c0_i32 = arith.constant 0 : i32
    %c0_i32_0 = arith.constant 0 : i32
    %c0_i32_1 = arith.constant 0 : i32
    return %c0_i32, %c0_i32_0 : i32, i32
  }
  func.func @transform_5(%arg0: i32) -> (i32, i32, i32) {
    %c0_i32 = arith.constant 0 : i32
    %c0_i32_0 = arith.constant 0 : i32
    %c0_i32_1 = arith.constant 0 : i32
    return %arg0, %c0_i32, %c0_i32_0 : i32, i32, i32
  }
}

</mosaic_0001>

<bundles_post_ra>
// kernel: tpu_custom_call.1
= control target key start
LH: loop header
LB: loop body
LE: loop exit
PB: predicated region body
PF: predicated region fallthrough
CT: control target
= control target key end

     0   :  { %10 = vsyncpa [#allocation3], 0  ;;  %s1990_s0 = inlined_call_operand.hbm [shape: f32[2,8,32], index: 0, kind: input, shape index: {}]   ;;  %s1991_s1 = inlined_call_operand.hbm [shape: f32[32,96], index: 1, kind: input, shape index: {}]   ;;  %s1992_s2 = inlined_call_operand.vmem [shape: f32[1,96], index: 2, kind: input, shape index: {}]   ;;  %s1993_s3 = inlined_call_operand.hbm [shape: f32[32,32], index: 3, kind: input, shape index: {}]   ;;  %s1994_s4 = inlined_call_operand.vmem [shape: f32[1,32], index: 4, kind: input, shape index: {}]   ;;  %s1995_s5 = inlined_call_operand.hbm [shape: f32[2,8,32], index: 5, kind: output, shape index: {}]  }
   0x1   :  { %12 = vsyncpa [#allocation3 + $0x1], 0 }
   0x2   :  { %13 = vsyncpa [#allocation6], 0 }
   0x3   :  { %14 = vsyncpa [#allocation4], 0 }
   0x4   :  { %16 = vsyncpa [#allocation4 + $0x1], 0  ;;  %s1674_s18 = smov 0   ;;  %s1676_s19 = smov 0  }
   0x5   :  { %s1678_s20 = smov 0   ;;  %s1680_s21 = smov 0  }
   0x6 LB: > { %s1695_s22 = sadd.s32 4294967295, %s1619_s21   ;;  %s1229_s23 = sadd.s32 4294967294, %s1619_s21   ;;  %s1619_s21 = sphi %s1680_s21, %s2015_s21   ;;  %s1615_s20 = sphi %s1678_s20, %s2014_s20   ;;  %s1611_s19 = sphi %s1676_s19, %s2013_s19   ;;  %s1607_s18 = sphi %s1674_s18, %s2012_s18  }
   0x7   : > { %p42_p0 = scmp.ne.s32.totalorder %s1611_s19, %s1607_s18  ;;  %p1996_p1 = scmp.eq.s32.totalorder %s1695_s22, 0 }
   0x8   : > { %p156_p3 = scmp.eq.s32.totalorder %s1229_s23, 1  ;;  %p1230_p5 = scmp.ge.s32.totalorder %s1619_s21, 1 }
   0x9   : > { %p1704_p4 = por %p1996_p1, %p42_p0  ;;  %p163_p7 = scmp.lt.s32.totalorder %s1619_s21, 3 }
   0xa   : > { %p1709_p6 = por %p156_p3, %p42_p0  ;;  %s1621_s27 = smov [#allocation5]  }
   0xb   : > { %s1999_s24 = scalar_select %p1704_p4, 1, 0 }
   0xc   : > { %s2000_s25 = scalar_select %p1709_p6, 1, 0 }
   0xd   : > { %p1714_p8 = pnand %p1230_p5, %p163_p7  ;;  %s175_s28 = sshll.u32 %s1621_s27, 4  ;;  %s1718_s28 = int_to_ptr.vmem [resolvable:$true] %s175_s28 }
   0xe   : > { %s1622_s30 = smov [#allocation7]   ;;  %s1463_s9 = scalar_lea.hbm %s1991_s1, 512 }
   0xf   : > { %p1373_p9 = pneg %p1714_p8  ;;  %s191_s6 = sshll.u32 %s1622_s30, 4  ;;  %s1729_s6 = int_to_ptr.vmem [resolvable:$true] %s191_s6 }
  0x10   : > { %p1464_p12 = scmp.ne.s32.totalorder %s1991_s1, %s1463_s9  ;;  %p1470_p5 = scmp.lt.u32.totalorder %s1463_s9, %s1991_s1 }
  0x11   : > { %p1725_p11 = pnand %p1373_p9, %p1996_p1 }
  0x13   : > { %p1465_p13 = pneg %p1725_p11 }
  0x15   : > { %p1466_p0 = pnand %p1465_p13, %p1464_p12 }
  0x17   : > { %p1467_p3 = pneg %p1466_p0 }
  0x19   : > { %p1472_p7 = pnand %p1470_p5, %p1467_p3 }
  0x1b   : > { %1475 = shalt.err (!%p1472_p7)
}
  0x1c   : > { %s1476_s14 = scalar_lea.vmem %s1718_s28, 512  ;;  %p1484_p2 = scmp.lt.s32.totalorder %s1718_s28, %s1718_s28 }
  0x1d   : > { %p1477_p9 = scmp.ne.s32.totalorder %s1718_s28, %s1476_s14  ;;  %p1485_p12 = scmp.lt.s32.totalorder %s1476_s14, %s1476_s14 }
  0x1f   : > { %p1479_p10 = pnand %p1477_p9, %p1465_p13  ;;  %p1486_p0 = por %p1485_p12, %p1484_p2 }
  0x21   : > { %p1480_p1 = pneg %p1479_p10 }
  0x23   : > { %p1487_p6 = pnand %p1486_p0, %p1480_p1 }
  0x25   : > { %1490 = shalt.err (!%p1487_p6)
}
  0x26   : > { %s1623_s15 = smov 128   ;;  %s1624_s16 = smov 8  }
  0x27   : > { %1376 = dma.hbm_to_vmem [thread:$0]  (!%p1725_p11), %s1991_s1, 512, %s1718_s28, [#allocation6], %s1623_s15, %s1623_s15, %s1624_s16  }
  0x28   : > { %s1491_s7 = scalar_lea.hbm %s1993_s3, 512 }
  0x29   : > { %p1492_p2 = scmp.ne.s32.totalorder %s1993_s3, %s1491_s7  ;;  %p1498_p10 = scmp.lt.u32.totalorder %s1491_s7, %s1993_s3 }
  0x2b   : > { %p1494_p1 = pnand %p1492_p2, %p1465_p13 }
  0x2d   : > { %p1495_p6 = pneg %p1494_p1 }
  0x2f   : > { %p1500_p3 = pnand %p1498_p10, %p1495_p6 }
  0x31   : > { %1503 = shalt.err (!%p1500_p3)
}
  0x32   : > { %s1504_s28 = scalar_lea.vmem %s1729_s6, 512  ;;  %p1512_p12 = scmp.lt.s32.totalorder %s1729_s6, %s1729_s6 }
  0x33   : > { %p1505_p5 = scmp.ne.s32.totalorder %s1729_s6, %s1504_s28  ;;  %p1513_p0 = scmp.lt.s32.totalorder %s1504_s28, %s1504_s28 }
  0x35   : > { %p1507_p7 = pnand %p1505_p5, %p1465_p13  ;;  %p1514_p2 = por %p1513_p0, %p1512_p12 }
  0x37   : > { %p1508_p9 = pneg %p1507_p7 }
  0x39   : > { %p1515_p1 = pnand %p1514_p2, %p1508_p9 }
  0x3b   : > { %1518 = shalt.err (!%p1515_p1)
}
  0x3c   : > { %1379 = dma.hbm_to_vmem [thread:$0]  (!%p1725_p11), %s1993_s3, 512, %s1729_s6, [#allocation6], %s1623_s15, %s1623_s15, %s1624_s16  }
  0x3d   : > { %s1784_s14 = sadd.s32 1, %s1619_s21   ;;  %s29_s29 = sadd.s32 1, %s1615_s20 }
  0x3e   : > { %s26_s17 = ssub.s32 %s1619_s21, %s1784_s14  ;;  %p36_p13 = scmp.ne.s32.totalorder %s1615_s20, %s1611_s19 }
  0x3f   : > { %p27_p6 = scmp.eq.s32.totalorder %s26_s17, 0  ;;  %p37_p10 = scmp.eq.s32.totalorder %s1619_s21, 0 }
  0x40   : > { %p2003_p3 = scmp.eq.s32.totalorder %s1695_s22, 1  ;;  %p1390_p7 = scmp.lt.s32.totalorder %s1619_s21, 2 }
  0x41   : > { %s1800_s27 = scalar_select %p27_p6, %s1615_s20, %s29_s29  }
  0x42   : > { %p1794_p5 = por %p2003_p3, %p36_p13  ;;  %p38_p9 = por %p37_p10, %p36_p13 }
  0x43   : > { %s208_s30 = sand.u32 1, %s1615_s20   ;;  %s1235_s6 = sshll.u32 %s1619_s21, 7 }
  0x44   : > { %s2004_s23 = scalar_select %p1794_p5, 1, 0 }
  0x45   : > { %s1234_s7 = sshll.u32 %s208_s30, 3  ;;  %s1807_s8 = scalar_lea.hbm %s1990_s0, %s1235_s6 }
  0x46   : > { %s212_s9 = scalar_lea.vmem [#allocation2], %s1234_s7  ;;  %p1811_p11 = pnand %p1390_p7, %p38_p9 }
  0x47   : > { %s219_s10 = sshll.u32 %s212_s9, 4  ;;  %s209_s28 = scalar_lea.sflag [#allocation3], %s208_s30  ;;  %s1809_s10 = int_to_ptr.vmem [resolvable:$true] %s219_s10 }
  0x48   : > { %s1519_s12 = scalar_lea.hbm %s1807_s8, 128  ;;  %p1521_p0 = pneg %p1811_p11 }
  0x49   : > { %p1520_p12 = scmp.ne.s32.totalorder %s1807_s8, %s1519_s12  ;;  %s1524_s17 = scalar_lea.hbm %s1990_s0, 256 }
  0x4a   : > { %p1525_p13 = scmp.lt.u32.totalorder %s1807_s8, %s1990_s0  ;;  %p1526_p6 = scmp.lt.u32.totalorder %s1524_s17, %s1519_s12 }
  0x4b   : > { %p1522_p2 = pnand %p1521_p0, %p1520_p12  ;;  %p1528_p3 = scmp.lt.u32.totalorder %s1519_s12, %s1807_s8 }
  0x4c   : > { %p1527_p10 = por %p1526_p6, %p1525_p13 }
  0x4d   : > { %p1523_p1 = pneg %p1522_p2 }
  0x4e   : > { %p1529_p7 = por %p1528_p3, %p1527_p10 }
  0x50   : > { %p1530_p9 = pnand %p1529_p7, %p1523_p1 }
  0x52   : > { %1533 = shalt.err (!%p1530_p9)
}
  0x53   : > { %s1534_s30 = scalar_lea.vmem %s1809_s10, 128  ;;  %s1625_s15 = smov [#allocation2]  }
  0x54   : > { %p1535_p12 = scmp.ne.s32.totalorder %s1809_s10, %s1534_s30  ;;  %s1539_s16 = sshll.u32 %s1625_s15, 4  ;;  %s1540_s16 = int_to_ptr.vmem [resolvable:$false] %s1539_s16 }
  0x55   : > { %s1541_s9 = scalar_lea.vmem %s1540_s16, 256  ;;  %p1542_p4 = scmp.lt.s32.totalorder %s1809_s10, %s1540_s16 }
  0x56   : > { %p1537_p2 = pnand %p1535_p12, %p1521_p0  ;;  %p1543_p13 = scmp.lt.s32.totalorder %s1541_s9, %s1534_s30 }
  0x58   : > { %p1538_p5 = pneg %p1537_p2  ;;  %p1544_p6 = por %p1543_p13, %p1542_p4 }
  0x5a   : > { %p1545_p10 = pnand %p1544_p6, %p1538_p5 }
  0x5c   : > { %1548 = shalt.err (!%p1545_p10)
}
  0x5d   : > { %1383 = dma.hbm_to_vmem [thread:$0]  (!%p1811_p11), %s1807_s8, 128, %s1809_s10, %s209_s28  }
  0x5e   : > { %228 = sbr.rel (%p1714_p8) target bundleno = 1759 (0x6df), region = 40  ;;  %s1843_s12 = sand.u32 (!%p1714_p8), 1, %s1611_s19  }
  0x5f   : > { %s1237_s13 = sshll.u32 (!%p1714_p8), %s1843_s12, 3  ;;  %s231_s29 = scalar_lea.sflag (!%p1714_p8), [#allocation3], %s1843_s12 }
  0x60   : > { %s234_s17 = scalar_lea.vmem (!%p1714_p8), [#allocation2], %s1237_s13  ;;  %p2006_p4 = scmp.ne.s32.totalorder (!%p1714_p8), %s1999_s24, 0 }
  0x65   : > { %1594 = dma.done.wait (%p2006_p4), %s231_s29, 128  }
  0x66   : > { %1596 = vsyncadd (%p2006_p4), %s231_s29, 4294967168  ;;  %p2007_p5 = scmp.eq.s32.totalorder %s1695_s22, 0 }
  0x68   : > { %1598 = dma.done.wait (%p2007_p5), [#allocation6], 1024   ;;  %p2008_p8 = pmov %p2007_p5 }
  0x69   : > { %v1626_v0 = vmov 0.0|0.0   ;;  %vm1627_vm0 = vmmov 0   ;;  %v1628_v1 = vmov 0.0   ;;  %v270_v2 = vld [vmem:[#allocation5] sm:$0xff]  ;;  %v271_v3 = vld [vmem:[#allocation5 + $0x8] sm:$0xff]  ;;  %v272_v4 = vld [vmem:[#allocation5 + $0x10] sm:$0xff]  ;;  %v355_v21 = vlaneseq }
  0x6a   : > { %1600 = vsyncadd (%p2008_p8), [#allocation6], 4294966272  ;;  %1349 = vmatprep.subr.bf16.mxu0 %v1626_v0  ;;  %1295 = vmatprep.mubr.msk.f32.mxu0 %vm1627_vm0, %v1628_v1  ;;  %v1350_v5 = vpack.c.bf16 %v271_v3, %v270_v2  ;;  %v273_v6 = vld [vmem:[#allocation5 + $0x18] sm:$0xff]  ;;  %vm281_vm1 = vcmask 261120   ;;  %v1241_v9 = vld [vmem:[%s1992_s2] ss:$0 sm:$0xff] }
  0x6b   : > { %1298 = vmatprep.subr.mxu1 %v1628_v1  ;;  %1300 = vmatprep.mubr.msk.f32.mxu1 %vm1627_vm0, %v1628_v1  ;;  %v1353_v7 = vpack.c.bf16 %v273_v6, %v272_v4  ;;  %v269_v8 = vld [vmem:[%s234_s17] sm:$0xff]  ;;  %s1629_s8 = smov 64   ;;  %s1630_s10 = smov 96   ;;  %vm363_vm2 = vcmask 64512   ;;  %v356_v22 = vshrl.u32 %v355_v21, 7  ;;  %v358_v23 = vand.u32 127, %v355_v21 }
  0x6c   : > { %1351 = vmatpush3.bf16.msra.mxu0 %v1350_v5  ;;  %s1631_s11 = smov 88   ;;  %s1632_s28 = smov 120   ;;  %v1041_v4 = vld [vmem:[#allocation7] sm:$0xff]  ;;  %v1042_v5 = vld [vmem:[#allocation7 + $0x8] sm:$0xff]  ;;  %vm1037_vm4 = vcmask 130048   ;;  %vm1039_vm5 = vcmask 195584  }
  0x6d   : > { %1352 = vmatprep.subr.bf16.mxu0 %v1626_v0  ;;  %s1633_s7 = smov 80   ;;  %s1634_s6 = smov 112   ;;  %vm359_vm3 = vcmp.le.s32.totalorder %v358_v23, %v356_v22 }
  0x6e   : > { %s1635_s30 = smov 72   ;;  %s1636_s15 = smov 104  }
  0x6f   : > { %s1637_s16 = smov 56   ;;  %s1638_s9 = smov 40  }
  0x70   : > { %1354 = vmatpush3.bf16.msra.mxu0 %v1353_v7  ;;  %s1639_s29 = smov 48   ;;  %v1356_v7 = vpack.c.bf16 %v1042_v5, %v1041_v4  ;;  %s1640_s17 = smov 8  }
  0x71   : > { %1318 = vmatprep.subr.mxu0 %v1628_v1  ;;  %s1641_s24 = smov 16   ;;  %s1642_s26 = smov 24  }
  0x72   : > { %p2009_p0 = scmp.ne.s32.totalorder %s2004_s23, 0 }
  0x73   : > { %1296 = vmatmul.mubr.msk.f32.vlgmr.msra.gmra.mrb[0].mxu0 %vm281_vm1, %v269_v8  ;;  %v1043_v8 = vld [vmem:[#allocation7 + $0x10] sm:$0xff] }
  0x74   : > { %1320 = vmatprep.mubr.msk.f32.mxu0 %vm1627_vm0, %v1628_v1 }
 0x146   : > { %v351_v10 = vpop.f32.mrb[0].mxu0 }
 0x147   : > { %v1871_v11 = vadd.f32 %v1241_v9, %v351_v10  ;;  %v1297_v12 = vpop.f32.mrb[1].mxu0  ;;  %v1044_v9 = vld [vmem:[#allocation7 + $0x18] sm:$0xff] }
 0x149   : > { %448 = vrot.lane.b32.xlu1 %v1871_v11, %s1629_s8  ;;  %361 = vrot.lane.b32.xlu0 %v1871_v11, %s1630_s10 }
 0x14d   : > { %528 = vrot.lane.b32.xlu1 %v1871_v11, %s1631_s11  ;;  %s1258_s11 = sshll.u32 %s1695_s22, 7 }
 0x151   : > { %526 = vrot.lane.b32.xlu1 %v1871_v11, %s1632_s28  ;;  %s268_s28 = scalar_lea.vmem [#allocation8], %s1237_s13  ;;  %s1643_s13 = smov [#allocation8]  }
 0x155   : > { %694 = vrot.lane.b32.xlu1 %v1871_v11, %s1633_s7  ;;  %s1140_s7 = sshll.u32 %s268_s28, 4  ;;  %s1947_s7 = int_to_ptr.vmem [resolvable:$true] %s1140_s7 }
 0x156   : > { %s1549_s22 = scalar_lea.vmem %s1947_s7, 128 }
 0x157   : > { %p1550_p11 = scmp.ne.s32.totalorder %s1947_s7, %s1549_s22 }
 0x159   : > { %692 = vrot.lane.b32.xlu1 %v1871_v11, %s1634_s6  ;;  %p1551_p1 = pnand %p1550_p11, %p2009_p0 }
 0x15b   : > { %p1552_p3 = pneg %p1551_p1 }
 0x15d   : > { %860 = vrot.lane.b32.xlu1 %v1871_v11, %s1635_s30 }
 0x161   : > { %858 = vrot.lane.b32.xlu1 %v1871_v11, %s1636_s15  ;;  %s1945_s15 = scalar_lea.hbm %s1995_s5, %s1258_s11 }
 0x1bb   : > { %v449_v13 = vpop.permute.xlu1 %448  ;;  %v362_v14 = vpop.permute.xlu0 %361 }
 0x1bc   : > { %1299 = vmatpush3.xpose.msk.msra.mxu1 %vm363_vm2, %v362_v14 }
 0x1bd   : > { %1303 = vmatprep.subr.mxu1 %v1628_v1 }
 0x1bf   : > { %v529_v15 = vpop.permute.xlu1 %528  ;;  %1301 = vmatmul.mubr.msk.f32.vlgmr.msra.gmra.mrb[0].mxu1 %vm363_vm2, %v1871_v11 }
 0x1c0   : > { %1304 = vmatpush3.msra.mxu1 %v449_v13  ;;  %1305 = vmatprep.mubr.msk.f32.mxu1 %vm1627_vm0, %v1628_v1 }
 0x1c1   : > { %1308 = vmatprep.subr.mxu1 %v1628_v1 }
 0x1c3   : > { %v527_v16 = vpop.permute.xlu1 %526 }
 0x1c7   : > { %v695_v17 = vpop.permute.xlu1 %694 }
 0x1c8   : > { %1319 = vmatpush3.xpose.msk.msra.mxu0 %vm363_vm2, %v695_v17 }
 0x1c9   : > { %1328 = vmatprep.subr.mxu0 %v1628_v1 }
 0x1cb   : > { %v693_v18 = vpop.permute.xlu1 %692 }
 0x1cc   : > { %1321 = vmatmul.mubr.msk.f32.vlgmr.msra.gmra.mrb[2].mxu0 %vm363_vm2, %v693_v18 }
 0x1cd   : > { %1330 = vmatprep.mubr.msk.f32.mxu0 %vm1627_vm0, %v1628_v1 }
 0x1cf   : > { %v861_v19 = vpop.permute.xlu1 %860 }
 0x1d0   : > { %1329 = vmatpush3.xpose.msk.msra.mxu0 %vm363_vm2, %v861_v19 }
 0x1d1   : > { %1355 = vmatprep.subr.bf16.mxu0 %v1626_v0 }
 0x1d3   : > { %v859_v20 = vpop.permute.xlu1 %858 }
 0x1d4   : > { %1331 = vmatmul.mubr.msk.f32.vlgmr.msra.gmra.mrb[4].mxu0 %vm363_vm2, %v859_v20 }
 0x1d5   : > { %1346 = vmatprep.mubr.msk.f32.mxu0 %vm1627_vm0, %v1628_v1  ;;  %1357 = vmatpush3.bf16.msra.mxu0 %v1356_v7 }
 0x1d6   : > { %1358 = vmatprep.subr.bf16.mxu0 %v1626_v0 }
 0x292   : > { %v434_v24 = vpop.f32.mrb[0].mxu1 }
 0x293   : > { %v438_v25 = vsel %vm359_vm3, %v434_v24, -1e+30  ;;  %v1302_v26 = vpop.f32.mrb[1].mxu1 }
 0x294   : > { %v439_v27 = vsel %vm363_vm2, %v438_v25, -inf }
 0x295   : > { %440 = vmax.xlane.f32.xlu0 %v439_v27 }
 0x29f   : > { %v766_v28 = vpop.f32.mrb[2].mxu0 }
 0x2a0   : > { %v1322_v29 = vpop.f32.mrb[3].mxu0  ;;  %v770_v32 = vsel %vm359_vm3, %v766_v28, -1e+30 }
 0x2a1   : > { %v771_v33 = vsel %vm363_vm2, %v770_v32, -inf }
 0x2a7   : > { %v932_v30 = vpop.f32.mrb[4].mxu0 }
 0x2a8   : > { %v1332_v31 = vpop.f32.mrb[5].mxu0  ;;  %v936_v34 = vsel %vm359_vm3, %v932_v30, -1e+30 }
 0x2a9   : > { %v937_v35 = vsel %vm363_vm2, %v936_v34, -inf  ;;  %v1255_v31 = vld [vmem:[%s1994_s4] ss:$0 sm:$0xff] }
 0x2ab   : > { %614 = vrot.lane.b32.xlu0 %v1871_v11, %s1637_s16  ;;  %s1127_s16 = scalar_lea.sflag [#allocation4], %s1843_s12 }
 0x2ca   : > { %772 = vmax.xlane.f32.xlu0 %v771_v33 }
 0x2ce   : > { %938 = vmax.xlane.f32.xlu0 %v937_v35 }
 0x2e4   : > { %946 = vrot.lane.b32.xlu0 %v1871_v11, %s1638_s9  ;;  %s1553_s9 = sshll.u32 %s1643_s13, 4  ;;  %s1554_s9 = int_to_ptr.vmem [resolvable:$false] %s1553_s9 }
 0x2e5   : > { %p1556_p7 = scmp.lt.s32.totalorder %s1947_s7, %s1554_s9 }
 0x322   : > { %v441_v36 = vpop.xlane.xlu0 %440 }
 0x323   : > { %v442_v37 = vsub.f32 %v438_v25, %v441_v36 }
 0x325   : > { %v443_v38 = vmul.f32 1.442695, %v442_v37 }
 0x326   : > { %v615_v40 = vpop.permute.xlu0 %614 }
 0x327   : > { %1447 = vpow2.f32 %v443_v38 }
 0x331   : > { %v1448_v39 = vpop.eup %1447 }
 0x332   : > { %1306 = vmatmul.mubr.msk.f32.vlgmr.msra.gmra.mrb[2].mxu1 %vm363_vm2, %v1448_v39  ;;  %v445_v2 = vsel %vm363_vm2, %v1448_v39, 0.0 }
 0x333   : > { %1309 = vmatpush3.xpose.msk.msra.mxu1 %vm363_vm2, %v529_v15  ;;  %1310 = vmatprep.mubr.msk.f32.mxu1 %vm1627_vm0, %v1628_v1 }
 0x334   : > { %1313 = vmatprep.subr.mxu1 %v1628_v1 }
 0x336   : > { %1311 = vmatmul.mubr.msk.f32.vlgmr.msra.gmra.mrb[4].mxu1 %vm363_vm2, %v527_v16 }
 0x337   : > { %1314 = vmatpush3.msra.mxu1 %v615_v40  ;;  %1315 = vmatprep.mubr.msk.f32.mxu1 %vm1627_vm0, %v1628_v1 }
 0x338   : > { %1323 = vmatprep.subr.mxu1 %v1628_v1 }
 0x357   : > { %v773_v47 = vpop.xlane.xlu0 %772 }
 0x358   : > { %v774_v48 = vsub.f32 %v770_v32, %v773_v47 }
 0x35a   : > { %v775_v49 = vmul.f32 1.442695, %v774_v48 }
 0x35b   : > { %v939_v52 = vpop.xlane.xlu0 %938 }
 0x35c   : > { %1449 = vpow2.f32 %v775_v49  ;;  %v940_v53 = vsub.f32 %v936_v34, %v939_v52 }
 0x35e   : > { %v941_v56 = vmul.f32 1.442695, %v940_v53 }
 0x35f   : > { %v947_v62 = vpop.permute.xlu0 %946 }
 0x366   : > { %v1450_v50 = vpop.eup %1449 }
 0x367   : > { %v777_v51 = vsel %vm363_vm2, %v1450_v50, 0.0 }
 0x405   : > { %v1915_v41 = vpop.f32.mrb[2].mxu1 }
 0x406   : > { %v1307_v42 = vpop.f32.mrb[3].mxu1 }
 0x409   : > { %v600_v43 = vpop.f32.mrb[4].mxu1 }
 0x40a   : > { %v604_v44 = vsel %vm359_vm3, %v600_v43, -1e+30  ;;  %v1312_v45 = vpop.f32.mrb[5].mxu1 }
 0x40b   : > { %v605_v46 = vsel %vm363_vm2, %v604_v44, -inf }
 0x40c   : > { %606 = vmax.xlane.f32.xlu1 %v605_v46 }
 0x41d   : > { %780 = vrot.lane.b32.xlu1 %v1871_v11, %s1639_s29  ;;  %v1359_v11 = vpack.c.bf16 %v1044_v9, %v1043_v8  ;;  %s1555_s29 = scalar_lea.vmem %s1554_s9, 256 }
 0x41e   : > { %p1557_p9 = scmp.lt.s32.totalorder %s1555_s29, %s1549_s22 }
 0x41f   : > { %1360 = vmatpush3.bf16.msra.mxu0 %v1359_v11 }
 0x420   : > { %p1558_p12 = por %p1557_p9, %p1556_p7 }
 0x422   : > { %p1559_p2 = pnand %p1558_p12, %p1552_p3 }
 0x441   : > { %778 = vadd.xlane.f32.xlu1 %v777_v51 }
 0x499   : > { %v607_v54 = vpop.xlane.xlu1 %606 }
 0x49a   : > { %v608_v55 = vsub.f32 %v604_v44, %v607_v54 }
 0x49c   : > { %v609_v57 = vmul.f32 1.442695, %v608_v55 }
 0x49d   : > { %v781_v59 = vpop.permute.xlu1 %780 }
 0x49e   : > { %1451 = vpow2.f32 %v609_v57 }
 0x49f   : > { %1453 = vpow2.f32 %v941_v56 }
 0x4a8   : > { %v1452_v58 = vpop.eup %1451 }
 0x4a9   : > { %1316 = vmatmul.mubr.msk.f32.vlgmr.msra.gmra.mrb[6].mxu1 %vm363_vm2, %v1452_v58  ;;  %v611_v60 = vsel %vm363_vm2, %v1452_v58, 0.0  ;;  %v1454_v61 = vpop.eup %1453 }
 0x4aa   : > { %1324 = vmatpush3.msra.mxu1 %v781_v59  ;;  %612 = vadd.xlane.f32.xlu0 %v611_v60  ;;  %v943_v63 = vsel %vm363_vm2, %v1454_v61, 0.0 }
 0x4ab   : > { %1325 = vmatprep.mubr.msk.f32.mxu1 %vm1627_vm0, %v1628_v1  ;;  %1333 = vmatprep.subr.mxu1 %v1628_v1 }
 0x4ad   : > { %1326 = vmatmul.mubr.msk.f32.vlgmr.msra.gmra.mrb[8].mxu1 %vm363_vm2, %v1450_v50 }
 0x4ae   : > { %1334 = vmatpush3.msra.mxu1 %v947_v62  ;;  %944 = vadd.xlane.f32.xlu0 %v943_v63 }
 0x4af   : > { %1335 = vmatprep.mubr.msk.f32.mxu1 %vm1627_vm0, %v1628_v1 }
 0x4b1   : > { %1336 = vmatmul.mubr.msk.f32.vlgmr.msra.gmra.mrb[10].mxu1 %vm363_vm2, %v1454_v61 }
 0x4b2   : > { %446 = vadd.xlane.f32.xlu0 %v445_v2 }
 0x4ce   : > { %v779_v6 = vpop.xlane.xlu1 %778 }
 0x537   : > { %v613_v3 = vpop.xlane.xlu0 %612 }
 0x538   : > { %1455 = vrcp.f32 %v613_v3 }
 0x539   : > { %1457 = vrcp.f32 %v779_v6 }
 0x53b   : > { %v945_v10 = vpop.xlane.xlu0 %944 }
 0x53c   : > { %1459 = vrcp.f32 %v945_v10 }
 0x53f   : > { %v447_v22 = vpop.xlane.xlu0 %446 }
 0x540   : > { %1461 = vrcp.f32 %v447_v22 }
 0x542   : > { %v1456_v1 = vpop.eup %1455 }
 0x543   : > { %v1458_v15 = vpop.eup %1457 }
 0x546   : > { %v1460_v19 = vpop.eup %1459 }
 0x54a   : > { %v1462_v23 = vpop.eup %1461 }
 0x54b   : > { %v525_v25 = vmul.f32 %v1462_v23, %v1915_v41 }
 0x57c   : > { %v686_v12 = vpop.f32.mrb[6].mxu1 }
 0x57d   : > { %v691_v13 = vmul.f32 %v1456_v1, %v686_v12  ;;  %v1317_v14 = vpop.f32.mrb[7].mxu1 }
 0x57f   : > { %1025 = vrot.lane.b32.xlu0 %v691_v13, %s1640_s17 }
 0x580   : > { %v852_v16 = vpop.f32.mrb[8].mxu1 }
 0x581   : > { %v857_v17 = vmul.f32 %v1458_v15, %v852_v16  ;;  %v1327_v18 = vpop.f32.mrb[9].mxu1 }
 0x583   : > { %1029 = vrot.lane.b32.xlu1 %v857_v17, %s1641_s24 }
 0x584   : > { %v1018_v0 = vpop.f32.mrb[10].mxu1 }
 0x585   : > { %v1023_v20 = vmul.f32 %v1460_v19, %v1018_v0  ;;  %v1337_v21 = vpop.f32.mrb[11].mxu1 }
 0x587   : > { %1033 = vrot.lane.b32.xlu0 %v1023_v20, %s1642_s26 }
 0x5f1   : > { %v1026_v24 = vpop.permute.xlu0 %1025 }
 0x5f2   : > { %v1036_v27 = vsel %vm363_vm2, %v525_v25, %v1026_v24 }
 0x5f5   : > { %v1030_v26 = vpop.permute.xlu1 %1029 }
 0x5f6   : > { %v1038_v28 = vsel %vm1037_vm4, %v1036_v27, %v1030_v26 }
 0x5f9   : > { %v1034_v29 = vpop.permute.xlu0 %1033 }
 0x5fa   : > { %v1040_v30 = vsel %vm1039_vm5, %v1038_v28, %v1034_v29 }
 0x5fb   : > { %1347 = vmatmul.mubr.msk.f32.vlgmr.msra.gmra.mrb[6].mxu0 %vm281_vm1, %v1040_v30 }
 0x6ce   : > { %v1121_v32 = vpop.f32.mrb[6].mxu0 }
 0x6cf   : > { %v1122_v33 = vadd.f32 %v1255_v31, %v1121_v32  ;;  %v1348_v34 = vpop.f32.mrb[7].mxu0 }
 0x6d1   : > { %1125 = vst.msk [vmem:[%s268_s28] sm:$0xff] %vm281_vm1, %v1122_v33 }
 0x6d2   : > { %1562 = shalt.err (!%p1559_p2)
}
 0x6d3   : > { %s1563_s12 = scalar_lea.hbm %s1945_s15, 128  ;;  %s1567_s26 = scalar_lea.hbm %s1995_s5, 256 }
 0x6d4   : > { %p1564_p13 = scmp.ne.s32.totalorder %s1945_s15, %s1563_s12  ;;  %p1568_p4 = scmp.lt.u32.totalorder %s1945_s15, %s1995_s5 }
 0x6d5   : > { %p1569_p5 = scmp.lt.u32.totalorder %s1567_s26, %s1563_s12  ;;  %p1571_p11 = scmp.lt.u32.totalorder %s1563_s12, %s1945_s15 }
 0x6d6   : > { %p1565_p6 = pnand %p1564_p13, %p2009_p0 }
 0x6d7   : > { %p1570_p8 = por %p1569_p5, %p1568_p4 }
 0x6d8   : > { %p1566_p10 = pneg %p1565_p6 }
 0x6d9   : > { %p1572_p1 = por %p1571_p11, %p1570_p8 }
 0x6db   : > { %p1573_p3 = pnand %p1572_p1, %p1566_p10 }
 0x6dd   : > { %1576 = shalt.err (!%p1573_p3)
}
 0x6de   : > { %1371 = dma.vmem_to_hbm [thread:$0]  (%p2009_p0), %s1947_s7, 128, %s1945_s15, %s1127_s16  }
 0x6df PF: > { %s1152_s11 = sand.u32 1, %s1607_s18   ;;  %p2010_p7 = scmp.ne.s32.totalorder %s2000_s25, 0 }
 0x6e0   : > { %p2011_p9 = scmp.ge.s32.totalorder %s1619_s21, 2  ;;  %s1153_s28 = scalar_lea.sflag [#allocation4], %s1152_s11 }
 0x6e2   : > { %p1385_p12 = pnand %p2011_p9, %p2010_p7 }
 0x6e4   : > { %1602 = dma.done.wait (!%p1385_p12), %s1153_s28, 128  }
 0x6e5   : > { %1604 = vsyncadd (!%p1385_p12), %s1153_s28, 4294967168  ;;  %p19_p2 = scmp.ge.s32.totalorder %s1784_s14, 4   ;;  %s2012_s18 = smov %s1611_s19 }
 0x6e6   : > { %s2013_s19 = smov %s1615_s20  ;;  %s2014_s20 = smov %s1800_s27 }
 0x6e7   : > { %s2015_s21 = smov %s1784_s14  ;;  %21 = sbr.rel (!%p19_p2) target bundleno = 6 (0x6), region = 93 }
 0x6ee   :  { %1158 = vsyncpa [#allocation3], 1 }
 0x6ef   :  { %1160 = vsyncpa [#allocation3 + $0x1], 1 }
 0x6f0   :  { %1161 = vsyncpa [#allocation6], 1 }
 0x6f1   :  { %1162 = vsyncpa [#allocation4], 1 }
 0x6f2   :  { %1164 = vsyncpa [#allocation4 + $0x1], 1 }

// kernel: tpu_custom_call.1
= control target key start
LH: loop header
LB: loop body
LE: loop exit
PB: predicated region body
PF: predicated region fallthrough
CT: control target
= control target key end

     0   :  { %10 = vsyncpa [#allocation3], 0  ;;  %s1990_s0 = inlined_call_operand.hbm [shape: f32[2,8,32], index: 0, kind: input, shape index: {}]   ;;  %s1991_s1 = inlined_call_operand.hbm [shape: f32[32,96], index: 1, kind: input, shape index: {}]   ;;  %s1992_s2 = inlined_call_operand.vmem [shape: f32[1,96], index: 2, kind: input, shape index: {}]   ;;  %s1993_s3 = inlined_call_operand.hbm [shape: f32[32,32], index: 3, kind: input, shape index: {}]   ;;  %s1994_s4 = inlined_call_operand.vmem [shape: f32[1,32], index: 4, kind: input, shape index: {}]   ;;  %s1995_s5 = inlined_call_operand.hbm [shape: f32[2,8,32], index: 5, kind: output, shape index: {}]  }
   0x1   :  { %12 = vsyncpa [#allocation3 + $0x1], 0 }
   0x2   :  { %13 = vsyncpa [#allocation6], 0 }
   0x3   :  { %14 = vsyncpa [#allocation4], 0 }
   0x4   :  { %16 = vsyncpa [#allocation4 + $0x1], 0  ;;  %s1674_s18 = smov 0   ;;  %s1676_s19 = smov 0  }
   0x5   :  { %s1678_s20 = smov 0   ;;  %s1680_s21 = smov 0  }
   0x6 LB: > { %s1695_s22 = sadd.s32 4294967295, %s1619_s21   ;;  %s1229_s23 = sadd.s32 4294967294, %s1619_s21   ;;  %s1619_s21 = sphi %s1680_s21, %s2015_s21   ;;  %s1615_s20 = sphi %s1678_s20, %s2014_s20   ;;  %s1611_s19 = sphi %s1676_s19, %s2013_s19   ;;  %s1607_s18 = sphi %s1674_s18, %s2012_s18  }
   0x7   : > { %p42_p0 = scmp.ne.s32.totalorder %s1611_s19, %s1607_s18  ;;  %p1996_p1 = scmp.eq.s32.totalorder %s1695_s22, 0 }
   0x8   : > { %p156_p3 = scmp.eq.s32.totalorder %s1229_s23, 1  ;;  %p1230_p5 = scmp.ge.s32.totalorder %s1619_s21, 1 }
   0x9   : > { %p1704_p4 = por %p1996_p1, %p42_p0  ;;  %p163_p7 = scmp.lt.s32.totalorder %s1619_s21, 3 }
   0xa   : > { %p1709_p6 = por %p156_p3, %p42_p0  ;;  %s1621_s27 = smov [#allocation5]  }
   0xb   : > { %s1999_s24 = scalar_select %p1704_p4, 1, 0 }
   0xc   : > { %s2000_s25 = scalar_select %p1709_p6, 1, 0 }
   0xd   : > { %p1714_p8 = pnand %p1230_p5, %p163_p7  ;;  %s175_s28 = sshll.u32 %s1621_s27, 4  ;;  %s1718_s28 = int_to_ptr.vmem [resolvable:$true] %s175_s28 }
   0xe   : > { %s1622_s30 = smov [#allocation7]   ;;  %s1463_s9 = scalar_lea.hbm %s1991_s1, 512 }
   0xf   : > { %p1373_p9 = pneg %p1714_p8  ;;  %s191_s6 = sshll.u32 %s1622_s30, 4  ;;  %s1729_s6 = int_to_ptr.vmem [resolvable:$true] %s191_s6 }
  0x10   : > { %p1464_p12 = scmp.ne.s32.totalorder %s1991_s1, %s1463_s9  ;;  %p1470_p5 = scmp.lt.u32.totalorder %s1463_s9, %s1991_s1 }
  0x11   : > { %p1725_p11 = pnand %p1373_p9, %p1996_p1 }
  0x13   : > { %p1465_p13 = pneg %p1725_p11 }
  0x15   : > { %p1466_p0 = pnand %p1465_p13, %p1464_p12 }
  0x17   : > { %p1467_p3 = pneg %p1466_p0 }
  0x19   : > { %p1472_p7 = pnand %p1470_p5, %p1467_p3 }
  0x1b   : > { %1475 = shalt.err (!%p1472_p7)
}
  0x1c   : > { %s1476_s14 = scalar_lea.vmem %s1718_s28, 512  ;;  %p1484_p2 = scmp.lt.s32.totalorder %s1718_s28, %s1718_s28 }
  0x1d   : > { %p1477_p9 = scmp.ne.s32.totalorder %s1718_s28, %s1476_s14  ;;  %p1485_p12 = scmp.lt.s32.totalorder %s1476_s14, %s1476_s14 }
  0x1f   : > { %p1479_p10 = pnand %p1477_p9, %p1465_p13  ;;  %p1486_p0 = por %p1485_p12, %p1484_p2 }
  0x21   : > { %p1480_p1 = pneg %p1479_p10 }
  0x23   : > { %p1487_p6 = pnand %p1486_p0, %p1480_p1 }
  0x25   : > { %1490 = shalt.err (!%p1487_p6)
}
  0x26   : > { %s1623_s15 = smov 128   ;;  %s1624_s16 = smov 8  }
  0x27   : > { %1376 = dma.hbm_to_vmem [thread:$0]  (!%p1725_p11), %s1991_s1, 512, %s1718_s28, [#allocation6], %s1623_s15, %s1623_s15, %s1624_s16  }
  0x28   : > { %s1491_s7 = scalar_lea.hbm %s1993_s3, 512 }
  0x29   : > { %p1492_p2 = scmp.ne.s32.totalorder %s1993_s3, %s1491_s7  ;;  %p1498_p10 = scmp.lt.u32.totalorder %s1491_s7, %s1993_s3 }
  0x2b   : > { %p1494_p1 = pnand %p1492_p2, %p1465_p13 }
  0x2d   : > { %p1495_p6 = pneg %p1494_p1 }
  0x2f   : > { %p1500_p3 = pnand %p1498_p10, %p1495_p6 }
  0x31   : > { %1503 = shalt.err (!%p1500_p3)
}
  0x32   : > { %s1504_s28 = scalar_lea.vmem %s1729_s6, 512  ;;  %p1512_p12 = scmp.lt.s32.totalorder %s1729_s6, %s1729_s6 }
  0x33   : > { %p1505_p5 = scmp.ne.s32.totalorder %s1729_s6, %s1504_s28  ;;  %p1513_p0 = scmp.lt.s32.totalorder %s1504_s28, %s1504_s28 }
  0x35   : > { %p1507_p7 = pnand %p1505_p5, %p1465_p13  ;;  %p1514_p2 = por %p1513_p0, %p1512_p12 }
  0x37   : > { %p1508_p9 = pneg %p1507_p7 }
  0x39   : > { %p1515_p1 = pnand %p1514_p2, %p1508_p9 }
  0x3b   : > { %1518 = shalt.err (!%p1515_p1)
}
  0x3c   : > { %1379 = dma.hbm_to_vmem [thread:$0]  (!%p1725_p11), %s1993_s3, 512, %s1729_s6, [#allocation6], %s1623_s15, %s1623_s15, %s1624_s16  }
  0x3d   : > { %s1784_s14 = sadd.s32 1, %s1619_s21   ;;  %s29_s29 = sadd.s32 1, %s1615_s20 }
  0x3e   : > { %s26_s17 = ssub.s32 %s1619_s21, %s1784_s14  ;;  %p36_p13 = scmp.ne.s32.totalorder %s1615_s20, %s1611_s19 }
  0x3f   : > { %p27_p6 = scmp.eq.s32.totalorder %s26_s17, 0  ;;  %p37_p10 = scmp.eq.s32.totalorder %s1619_s21, 0 }
  0x40   : > { %p2003_p3 = scmp.eq.s32.totalorder %s1695_s22, 1  ;;  %p1390_p7 = scmp.lt.s32.totalorder %s1619_s21, 2 }
  0x41   : > { %s1800_s27 = scalar_select %p27_p6, %s1615_s20, %s29_s29  }
  0x42   : > { %p1794_p5 = por %p2003_p3, %p36_p13  ;;  %p38_p9 = por %p37_p10, %p36_p13 }
  0x43   : > { %s208_s30 = sand.u32 1, %s1615_s20   ;;  %s1235_s6 = sshll.u32 %s1619_s21, 7 }
  0x44   : > { %s2004_s23 = scalar_select %p1794_p5, 1, 0 }
  0x45   : > { %s1234_s7 = sshll.u32 %s208_s30, 3  ;;  %s1807_s8 = scalar_lea.hbm %s1990_s0, %s1235_s6 }
  0x46   : > { %s212_s9 = scalar_lea.vmem [#allocation2], %s1234_s7  ;;  %p1811_p11 = pnand %p1390_p7, %p38_p9 }
  0x47   : > { %s219_s10 = sshll.u32 %s212_s9, 4  ;;  %s209_s28 = scalar_lea.sflag [#allocation3], %s208_s30  ;;  %s1809_s10 = int_to_ptr.vmem [resolvable:$true] %s219_s10 }
  0x48   : > { %s1519_s12 = scalar_lea.hbm %s1807_s8, 128  ;;  %p1521_p0 = pneg %p1811_p11 }
  0x49   : > { %p1520_p12 = scmp.ne.s32.totalorder %s1807_s8, %s1519_s12  ;;  %s1524_s17 = scalar_lea.hbm %s1990_s0, 256 }
  0x4a   : > { %p1525_p13 = scmp.lt.u32.totalorder %s1807_s8, %s1990_s0  ;;  %p1526_p6 = scmp.lt.u32.totalorder %s1524_s17, %s1519_s12 }
  0x4b   : > { %p1522_p2 = pnand %p1521_p0, %p1520_p12  ;;  %p1528_p3 = scmp.lt.u32.totalorder %s1519_s12, %s1807_s8 }
  0x4c   : > { %p1527_p10 = por %p1526_p6, %p1525_p13 }
  0x4d   : > { %p1523_p1 = pneg %p1522_p2 }
  0x4e   : > { %p1529_p7 = por %p1528_p3, %p1527_p10 }
  0x50   : > { %p1530_p9 = pnand %p1529_p7, %p1523_p1 }
  0x52   : > { %1533 = shalt.err (!%p1530_p9)
}
  0x53   : > { %s1534_s30 = scalar_lea.vmem %s1809_s10, 128  ;;  %s1625_s15 = smov [#allocation2]  }
  0x54   : > { %p1535_p12 = scmp.ne.s32.totalorder %s1809_s10, %s1534_s30  ;;  %s1539_s16 = sshll.u32 %s1625_s15, 4  ;;  %s1540_s16 = int_to_ptr.vmem [resolvable:$false] %s1539_s16 }
  0x55   : > { %s1541_s9 = scalar_lea.vmem %s1540_s16, 256  ;;  %p1542_p4 = scmp.lt.s32.totalorder %s1809_s10, %s1540_s16 }
  0x56   : > { %p1537_p2 = pnand %p1535_p12, %p1521_p0  ;;  %p1543_p13 = scmp.lt.s32.totalorder %s1541_s9, %s1534_s30 }
  0x58   : > { %p1538_p5 = pneg %p1537_p2  ;;  %p1544_p6 = por %p1543_p13, %p1542_p4 }
  0x5a   : > { %p1545_p10 = pnand %p1544_p6, %p1538_p5 }
  0x5c   : > { %1548 = shalt.err (!%p1545_p10)
}
  0x5d   : > { %1383 = dma.hbm_to_vmem [thread:$0]  (!%p1811_p11), %s1807_s8, 128, %s1809_s10, %s209_s28  }
  0x5e   : > { %228 = sbr.rel (%p1714_p8) target bundleno = 1759 (0x6df), region = 40  ;;  %s1843_s12 = sand.u32 (!%p1714_p8), 1, %s1611_s19  }
  0x5f   : > { %s1237_s13 = sshll.u32 (!%p1714_p8), %s1843_s12, 3  ;;  %s231_s29 = scalar_lea.sflag (!%p1714_p8), [#allocation3], %s1843_s12 }
  0x60   : > { %s234_s17 = scalar_lea.vmem (!%p1714_p8), [#allocation2], %s1237_s13  ;;  %p2006_p4 = scmp.ne.s32.totalorder (!%p1714_p8), %s1999_s24, 0 }
  0x65   : > { %1594 = dma.done.wait (%p2006_p4), %s231_s29, 128  }
  0x66   : > { %1596 = vsyncadd (%p2006_p4), %s231_s29, 4294967168  ;;  %p2007_p5 = scmp.eq.s32.totalorder %s1695_s22, 0 }
  0x68   : > { %1598 = dma.done.wait (%p2007_p5), [#allocation6], 1024   ;;  %p2008_p8 = pmov %p2007_p5 }
  0x69   : > { %v1626_v0 = vmov 0.0|0.0   ;;  %vm1627_vm0 = vmmov 0   ;;  %v1628_v1 = vmov 0.0   ;;  %v270_v2 = vld [vmem:[#allocation5] sm:$0xff]  ;;  %v271_v3 = vld [vmem:[#allocation5 + $0x8] sm:$0xff]  ;;  %v272_v4 = vld [vmem:[#allocation5 + $0x10] sm:$0xff]  ;;  %v355_v21 = vlaneseq }
  0x6a   : > { %1600 = vsyncadd (%p2008_p8), [#allocation6], 4294966272  ;;  %1349 = vmatprep.subr.bf16.mxu0 %v1626_v0  ;;  %1295 = vmatprep.mubr.msk.f32.mxu0 %vm1627_vm0, %v1628_v1  ;;  %v1350_v5 = vpack.c.bf16 %v271_v3, %v270_v2  ;;  %v273_v6 = vld [vmem:[#allocation5 + $0x18] sm:$0xff]  ;;  %vm281_vm1 = vcmask 261120   ;;  %v1241_v9 = vld [vmem:[%s1992_s2] ss:$0 sm:$0xff] }
  0x6b   : > { %1298 = vmatprep.subr.mxu1 %v1628_v1  ;;  %1300 = vmatprep.mubr.msk.f32.mxu1 %vm1627_vm0, %v1628_v1  ;;  %v1353_v7 = vpack.c.bf16 %v273_v6, %v272_v4  ;;  %v269_v8 = vld [vmem:[%s234_s17] sm:$0xff]  ;;  %s1629_s8 = smov 64   ;;  %s1630_s10 = smov 96   ;;  %vm363_vm2 = vcmask 64512   ;;  %v356_v22 = vshrl.u32 %v355_v21, 7  ;;  %v358_v23 = vand.u32 127, %v355_v21 }
  0x6c   : > { %1351 = vmatpush3.bf16.msra.mxu0 %v1350_v5  ;;  %s1631_s11 = smov 88   ;;  %s1632_s28 = smov 120   ;;  %v1041_v4 = vld [vmem:[#allocation7] sm:$0xff]  ;;  %v1042_v5 = vld [vmem:[#allocation7 + $0x8] sm:$0xff]  ;;  %vm1037_vm4 = vcmask 130048   ;;  %vm1039_vm5 = vcmask 195584  }
  0x6d   : > { %1352 = vmatprep.subr.bf16.mxu0 %v1626_v0  ;;  %s1633_s7 = smov 80   ;;  %s1634_s6 = smov 112   ;;  %vm359_vm3 = vcmp.le.s32.totalorder %v358_v23, %v356_v22 }
  0x6e   : > { %s1635_s30 = smov 72   ;;  %s1636_s15 = smov 104  }
  0x6f   : > { %s1637_s16 = smov 56   ;;  %s1638_s9 = smov 40  }
  0x70   : > { %1354 = vmatpush3.bf16.msra.mxu0 %v1353_v7  ;;  %s1639_s29 = smov 48   ;;  %v1356_v7 = vpack.c.bf16 %v1042_v5, %v1041_v4  ;;  %s1640_s17 = smov 8  }
  0x71   : > { %1318 = vmatprep.subr.mxu0 %v1628_v1  ;;  %s1641_s24 = smov 16   ;;  %s1642_s26 = smov 24  }
  0x72   : > { %p2009_p0 = scmp.ne.s32.totalorder %s2004_s23, 0 }
  0x73   : > { %1296 = vmatmul.mubr.msk.f32.vlgmr.msra.gmra.mrb[0].mxu0 %vm281_vm1, %v269_v8  ;;  %v1043_v8 = vld [vmem:[#allocation7 + $0x10] sm:$0xff] }
  0x74   : > { %1320 = vmatprep.mubr.msk.f32.mxu0 %vm1627_vm0, %v1628_v1 }
 0x146   : > { %v351_v10 = vpop.f32.mrb[0].mxu0 }
 0x147   : > { %v1871_v11 = vadd.f32 %v1241_v9, %v351_v10  ;;  %v1297_v12 = vpop.f32.mrb[1].mxu0  ;;  %v1044_v9 = vld [vmem:[#allocation7 + $0x18] sm:$0xff] }
 0x149   : > { %448 = vrot.lane.b32.xlu1 %v1871_v11, %s1629_s8  ;;  %361 = vrot.lane.b32.xlu0 %v1871_v11, %s1630_s10 }
 0x14d   : > { %528 = vrot.lane.b32.xlu1 %v1871_v11, %s1631_s11  ;;  %s1258_s11 = sshll.u32 %s1695_s22, 7 }
 0x151   : > { %526 = vrot.lane.b32.xlu1 %v1871_v11, %s1632_s28  ;;  %s268_s28 = scalar_lea.vmem [#allocation8], %s1237_s13  ;;  %s1643_s13 = smov [#allocation8]  }
 0x155   : > { %694 = vrot.lane.b32.xlu1 %v1871_v11, %s1633_s7  ;;  %s1140_s7 = sshll.u32 %s268_s28, 4  ;;  %s1947_s7 = int_to_ptr.vmem [resolvable:$true] %s1140_s7 }
 0x156   : > { %s1549_s22 = scalar_lea.vmem %s1947_s7, 128 }
 0x157   : > { %p1550_p11 = scmp.ne.s32.totalorder %s1947_s7, %s1549_s22 }
 0x159   : > { %692 = vrot.lane.b32.xlu1 %v1871_v11, %s1634_s6  ;;  %p1551_p1 = pnand %p1550_p11, %p2009_p0 }
 0x15b   : > { %p1552_p3 = pneg %p1551_p1 }
 0x15d   : > { %860 = vrot.lane.b32.xlu1 %v1871_v11, %s1635_s30 }
 0x161   : > { %858 = vrot.lane.b32.xlu1 %v1871_v11, %s1636_s15  ;;  %s1945_s15 = scalar_lea.hbm %s1995_s5, %s1258_s11 }
 0x1bb   : > { %v449_v13 = vpop.permute.xlu1 %448  ;;  %v362_v14 = vpop.permute.xlu0 %361 }
 0x1bc   : > { %1299 = vmatpush3.xpose.msk.msra.mxu1 %vm363_vm2, %v362_v14 }
 0x1bd   : > { %1303 = vmatprep.subr.mxu1 %v1628_v1 }
 0x1bf   : > { %v529_v15 = vpop.permute.xlu1 %528  ;;  %1301 = vmatmul.mubr.msk.f32.vlgmr.msra.gmra.mrb[0].mxu1 %vm363_vm2, %v1871_v11 }
 0x1c0   : > { %1304 = vmatpush3.msra.mxu1 %v449_v13  ;;  %1305 = vmatprep.mubr.msk.f32.mxu1 %vm1627_vm0, %v1628_v1 }
 0x1c1   : > { %1308 = vmatprep.subr.mxu1 %v1628_v1 }
 0x1c3   : > { %v527_v16 = vpop.permute.xlu1 %526 }
 0x1c7   : > { %v695_v17 = vpop.permute.xlu1 %694 }
 0x1c8   : > { %1319 = vmatpush3.xpose.msk.msra.mxu0 %vm363_vm2, %v695_v17 }
 0x1c9   : > { %1328 = vmatprep.subr.mxu0 %v1628_v1 }
 0x1cb   : > { %v693_v18 = vpop.permute.xlu1 %692 }
 0x1cc   : > { %1321 = vmatmul.mubr.msk.f32.vlgmr.msra.gmra.mrb[2].mxu0 %vm363_vm2, %v693_v18 }
 0x1cd   : > { %1330 = vmatprep.mubr.msk.f32.mxu0 %vm1627_vm0, %v1628_v1 }
 0x1cf   : > { %v861_v19 = vpop.permute.xlu1 %860 }
 0x1d0   : > { %1329 = vmatpush3.xpose.msk.msra.mxu0 %vm363_vm2, %v861_v19 }
 0x1d1   : > { %1355 = vmatprep.subr.bf16.mxu0 %v1626_v0 }
 0x1d3   : > { %v859_v20 = vpop.permute.xlu1 %858 }
 0x1d4   : > { %1331 = vmatmul.mubr.msk.f32.vlgmr.msra.gmra.mrb[4].mxu0 %vm363_vm2, %v859_v20 }
 0x1d5   : > { %1346 = vmatprep.mubr.msk.f32.mxu0 %vm1627_vm0, %v1628_v1  ;;  %1357 = vmatpush3.bf16.msra.mxu0 %v1356_v7 }
 0x1d6   : > { %1358 = vmatprep.subr.bf16.mxu0 %v1626_v0 }
 0x292   : > { %v434_v24 = vpop.f32.mrb[0].mxu1 }
 0x293   : > { %v438_v25 = vsel %vm359_vm3, %v434_v24, -1e+30  ;;  %v1302_v26 = vpop.f32.mrb[1].mxu1 }
 0x294   : > { %v439_v27 = vsel %vm363_vm2, %v438_v25, -inf }
 0x295   : > { %440 = vmax.xlane.f32.xlu0 %v439_v27 }
 0x29f   : > { %v766_v28 = vpop.f32.mrb[2].mxu0 }
 0x2a0   : > { %v1322_v29 = vpop.f32.mrb[3].mxu0  ;;  %v770_v32 = vsel %vm359_vm3, %v766_v28, -1e+30 }
 0x2a1   : > { %v771_v33 = vsel %vm363_vm2, %v770_v32, -inf }
 0x2a7   : > { %v932_v30 = vpop.f32.mrb[4].mxu0 }
 0x2a8   : > { %v1332_v31 = vpop.f32.mrb[5].mxu0  ;;  %v936_v34 = vsel %vm359_vm3, %v932_v30, -1e+30 }
 0x2a9   : > { %v937_v35 = vsel %vm363_vm2, %v936_v34, -inf  ;;  %v1255_v31 = vld [vmem:[%s1994_s4] ss:$0 sm:$0xff] }
 0x2ab   : > { %614 = vrot.lane.b32.xlu0 %v1871_v11, %s1637_s16  ;;  %s1127_s16 = scalar_lea.sflag [#allocation4], %s1843_s12 }
 0x2ca   : > { %772 = vmax.xlane.f32.xlu0 %v771_v33 }
 0x2ce   : > { %938 = vmax.xlane.f32.xlu0 %v937_v35 }
 0x2e4   : > { %946 = vrot.lane.b32.xlu0 %v1871_v11, %s1638_s9  ;;  %s1553_s9 = sshll.u32 %s1643_s13, 4  ;;  %s1554_s9 = int_to_ptr.vmem [resolvable:$false] %s1553_s9 }
 0x2e5   : > { %p1556_p7 = scmp.lt.s32.totalorder %s1947_s7, %s1554_s9 }
 0x322   : > { %v441_v36 = vpop.xlane.xlu0 %440 }
 0x323   : > { %v442_v37 = vsub.f32 %v438_v25, %v441_v36 }
 0x325   : > { %v443_v38 = vmul.f32 1.442695, %v442_v37 }
 0x326   : > { %v615_v40 = vpop.permute.xlu0 %614 }
 0x327   : > { %1447 = vpow2.f32 %v443_v38 }
 0x331   : > { %v1448_v39 = vpop.eup %1447 }
 0x332   : > { %1306 = vmatmul.mubr.msk.f32.vlgmr.msra.gmra.mrb[2].mxu1 %vm363_vm2, %v1448_v39  ;;  %v445_v2 = vsel %vm363_vm2, %v1448_v39, 0.0 }
 0x333   : > { %1309 = vmatpush3.xpose.msk.msra.mxu1 %vm363_vm2, %v529_v15  ;;  %1310 = vmatprep.mubr.msk.f32.mxu1 %vm1627_vm0, %v1628_v1 }
 0x334   : > { %1313 = vmatprep.subr.mxu1 %v1628_v1 }
 0x336   : > { %1311 = vmatmul.mubr.msk.f32.vlgmr.msra.gmra.mrb[4].mxu1 %vm363_vm2, %v527_v16 }
 0x337   : > { %1314 = vmatpush3.msra.mxu1 %v615_v40  ;;  %1315 = vmatprep.mubr.msk.f32.mxu1 %vm1627_vm0, %v1628_v1 }
 0x338   : > { %1323 = vmatprep.subr.mxu1 %v1628_v1 }
 0x357   : > { %v773_v47 = vpop.xlane.xlu0 %772 }
 0x358   : > { %v774_v48 = vsub.f32 %v770_v32, %v773_v47 }
 0x35a   : > { %v775_v49 = vmul.f32 1.442695, %v774_v48 }
 0x35b   : > { %v939_v52 = vpop.xlane.xlu0 %938 }
 0x35c   : > { %1449 = vpow2.f32 %v775_v49  ;;  %v940_v53 = vsub.f32 %v936_v34, %v939_v52 }
 0x35e   : > { %v941_v56 = vmul.f32 1.442695, %v940_v53 }
 0x35f   : > { %v947_v62 = vpop.permute.xlu0 %946 }
 0x366   : > { %v1450_v50 = vpop.eup %1449 }
 0x367   : > { %v777_v51 = vsel %vm363_vm2, %v1450_v50, 0.0 }
 0x405   : > { %v1915_v41 = vpop.f32.mrb[2].mxu1 }
 0x406   : > { %v1307_v42 = vpop.f32.mrb[3].mxu1 }
 0x409   : > { %v600_v43 = vpop.f32.mrb[4].mxu1 }
 0x40a   : > { %v604_v44 = vsel %vm359_vm3, %v600_v43, -1e+30  ;;  %v1312_v45 = vpop.f32.mrb[5].mxu1 }
 0x40b   : > { %v605_v46 = vsel %vm363_vm2, %v604_v44, -inf }
 0x40c   : > { %606 = vmax.xlane.f32.xlu1 %v605_v46 }
 0x41d   : > { %780 = vrot.lane.b32.xlu1 %v1871_v11, %s1639_s29  ;;  %v1359_v11 = vpack.c.bf16 %v1044_v9, %v1043_v8  ;;  %s1555_s29 = scalar_lea.vmem %s1554_s9, 256 }
 0x41e   : > { %p1557_p9 = scmp.lt.s32.totalorder %s1555_s29, %s1549_s22 }
 0x41f   : > { %1360 = vmatpush3.bf16.msra.mxu0 %v1359_v11 }
 0x420   : > { %p1558_p12 = por %p1557_p9, %p1556_p7 }
 0x422   : > { %p1559_p2 = pnand %p1558_p12, %p1552_p3 }
 0x441   : > { %778 = vadd.xlane.f32.xlu1 %v777_v51 }
 0x499   : > { %v607_v54 = vpop.xlane.xlu1 %606 }
 0x49a   : > { %v608_v55 = vsub.f32 %v604_v44, %v607_v54 }
 0x49c   : > { %v609_v57 = vmul.f32 1.442695, %v608_v55 }
 0x49d   : > { %v781_v59 = vpop.permute.xlu1 %780 }
 0x49e   : > { %1451 = vpow2.f32 %v609_v57 }
 0x49f   : > { %1453 = vpow2.f32 %v941_v56 }
 0x4a8   : > { %v1452_v58 = vpop.eup %1451 }
 0x4a9   : > { %1316 = vmatmul.mubr.msk.f32.vlgmr.msra.gmra.mrb[6].mxu1 %vm363_vm2, %v1452_v58  ;;  %v611_v60 = vsel %vm363_vm2, %v1452_v58, 0.0  ;;  %v1454_v61 = vpop.eup %1453 }
 0x4aa   : > { %1324 = vmatpush3.msra.mxu1 %v781_v59  ;;  %612 = vadd.xlane.f32.xlu0 %v611_v60  ;;  %v943_v63 = vsel %vm363_vm2, %v1454_v61, 0.0 }
 0x4ab   : > { %1325 = vmatprep.mubr.msk.f32.mxu1 %vm1627_vm0, %v1628_v1  ;;  %1333 = vmatprep.subr.mxu1 %v1628_v1 }
 0x4ad   : > { %1326 = vmatmul.mubr.msk.f32.vlgmr.msra.gmra.mrb[8].mxu1 %vm363_vm2, %v1450_v50 }
 0x4ae   : > { %1334 = vmatpush3.msra.mxu1 %v947_v62  ;;  %944 = vadd.xlane.f32.xlu0 %v943_v63 }
 0x4af   : > { %1335 = vmatprep.mubr.msk.f32.mxu1 %vm1627_vm0, %v1628_v1 }
 0x4b1   : > { %1336 = vmatmul.mubr.msk.f32.vlgmr.msra.gmra.mrb[10].mxu1 %vm363_vm2, %v1454_v61 }
 0x4b2   : > { %446 = vadd.xlane.f32.xlu0 %v445_v2 }
 0x4ce   : > { %v779_v6 = vpop.xlane.xlu1 %778 }
 0x537   : > { %v613_v3 = vpop.xlane.xlu0 %612 }
 0x538   : > { %1455 = vrcp.f32 %v613_v3 }
 0x539   : > { %1457 = vrcp.f32 %v779_v6 }
 0x53b   : > { %v945_v10 = vpop.xlane.xlu0 %944 }
 0x53c   : > { %1459 = vrcp.f32 %v945_v10 }
 0x53f   : > { %v447_v22 = vpop.xlane.xlu0 %446 }
 0x540   : > { %1461 = vrcp.f32 %v447_v22 }
 0x542   : > { %v1456_v1 = vpop.eup %1455 }
 0x543   : > { %v1458_v15 = vpop.eup %1457 }
 0x546   : > { %v1460_v19 = vpop.eup %1459 }
 0x54a   : > { %v1462_v23 = vpop.eup %1461 }
 0x54b   : > { %v525_v25 = vmul.f32 %v1462_v23, %v1915_v41 }
 0x57c   : > { %v686_v12 = vpop.f32.mrb[6].mxu1 }
 0x57d   : > { %v691_v13 = vmul.f32 %v1456_v1, %v686_v12  ;;  %v1317_v14 = vpop.f32.mrb[7].mxu1 }
 0x57f   : > { %1025 = vrot.lane.b32.xlu0 %v691_v13, %s1640_s17 }
 0x580   : > { %v852_v16 = vpop.f32.mrb[8].mxu1 }
 0x581   : > { %v857_v17 = vmul.f32 %v1458_v15, %v852_v16  ;;  %v1327_v18 = vpop.f32.mrb[9].mxu1 }
 0x583   : > { %1029 = vrot.lane.b32.xlu1 %v857_v17, %s1641_s24 }
 0x584   : > { %v1018_v0 = vpop.f32.mrb[10].mxu1 }
 0x585   : > { %v1023_v20 = vmul.f32 %v1460_v19, %v1018_v0  ;;  %v1337_v21 = vpop.f32.mrb[11].mxu1 }
 0x587   : > { %1033 = vrot.lane.b32.xlu0 %v1023_v20, %s1642_s26 }
 0x5f1   : > { %v1026_v24 = vpop.permute.xlu0 %1025 }
 0x5f2   : > { %v1036_v27 = vsel %vm363_vm2, %v525_v25, %v1026_v24 }
 0x5f5   : > { %v1030_v26 = vpop.permute.xlu1 %1029 }
 0x5f6   : > { %v1038_v28 = vsel %vm1037_vm4, %v1036_v27, %v1030_v26 }
 0x5f9   : > { %v1034_v29 = vpop.permute.xlu0 %1033 }
 0x5fa   : > { %v1040_v30 = vsel %vm1039_vm5, %v1038_v28, %v1034_v29 }
 0x5fb   : > { %1347 = vmatmul.mubr.msk.f32.vlgmr.msra.gmra.mrb[6].mxu0 %vm281_vm1, %v1040_v30 }
 0x6ce   : > { %v1121_v32 = vpop.f32.mrb[6].mxu0 }
 0x6cf   : > { %v1122_v33 = vadd.f32 %v1255_v31, %v1121_v32  ;;  %v1348_v34 = vpop.f32.mrb[7].mxu0 }
 0x6d1   : > { %1125 = vst.msk [vmem:[%s268_s28] sm:$0xff] %vm281_vm1, %v1122_v33 }
 0x6d2   : > { %1562 = shalt.err (!%p1559_p2)
}
 0x6d3   : > { %s1563_s12 = scalar_lea.hbm %s1945_s15, 128  ;;  %s1567_s26 = scalar_lea.hbm %s1995_s5, 256 }
 0x6d4   : > { %p1564_p13 = scmp.ne.s32.totalorder %s1945_s15, %s1563_s12  ;;  %p1568_p4 = scmp.lt.u32.totalorder %s1945_s15, %s1995_s5 }
 0x6d5   : > { %p1569_p5 = scmp.lt.u32.totalorder %s1567_s26, %s1563_s12  ;;  %p1571_p11 = scmp.lt.u32.totalorder %s1563_s12, %s1945_s15 }
 0x6d6   : > { %p1565_p6 = pnand %p1564_p13, %p2009_p0 }
 0x6d7   : > { %p1570_p8 = por %p1569_p5, %p1568_p4 }
 0x6d8   : > { %p1566_p10 = pneg %p1565_p6 }
 0x6d9   : > { %p1572_p1 = por %p1571_p11, %p1570_p8 }
 0x6db   : > { %p1573_p3 = pnand %p1572_p1, %p1566_p10 }
 0x6dd   : > { %1576 = shalt.err (!%p1573_p3)
}
 0x6de   : > { %1371 = dma.vmem_to_hbm [thread:$0]  (%p2009_p0), %s1947_s7, 128, %s1945_s15, %s1127_s16  }
 0x6df PF: > { %s1152_s11 = sand.u32 1, %s1607_s18   ;;  %p2010_p7 = scmp.ne.s32.totalorder %s2000_s25, 0 }
 0x6e0   : > { %p2011_p9 = scmp.ge.s32.totalorder %s1619_s21, 2  ;;  %s1153_s28 = scalar_lea.sflag [#allocation4], %s1152_s11 }
 0x6e2   : > { %p1385_p12 = pnand %p2011_p9, %p2010_p7 }
 0x6e4   : > { %1602 = dma.done.wait (!%p1385_p12), %s1153_s28, 128  }
 0x6e5   : > { %1604 = vsyncadd (!%p1385_p12), %s1153_s28, 4294967168  ;;  %p19_p2 = scmp.ge.s32.totalorder %s1784_s14, 4   ;;  %s2012_s18 = smov %s1611_s19 }
 0x6e6   : > { %s2013_s19 = smov %s1615_s20  ;;  %s2014_s20 = smov %s1800_s27 }
 0x6e7   : > { %s2015_s21 = smov %s1784_s14  ;;  %21 = sbr.rel (!%p19_p2) target bundleno = 6 (0x6), region = 93 }
 0x6ee   :  { %1158 = vsyncpa [#allocation3], 1 }
 0x6ef   :  { %1160 = vsyncpa [#allocation3 + $0x1], 1 }
 0x6f0   :  { %1161 = vsyncpa [#allocation6], 1 }
 0x6f1   :  { %1162 = vsyncpa [#allocation4], 1 }
 0x6f2   :  { %1164 = vsyncpa [#allocation4 + $0x1], 1 }

</bundles_post_ra>
